<compile_context>
chip_gen: v5e
topology: v5e:2x2
jax: 0.10.0
libtpu: 0.0.40
codegen_flags: <defaults>
</compile_context>

<pallas_src>
from functools import partial

import jax
import jax.numpy as jnp
from jax.experimental import pallas as pl
from jax.experimental.pallas import tpu as pltpu

LANE = 128       # vreg lane width / MXU-friendly width
SUBLANE = 8      # vreg sublane count
NODE_PAD = 128   # pad node rows to the systolic-array width


def _rup(x, m):
    return ((x + m - 1) // m) * m


def _pad2(a, rows, cols):
    return jnp.pad(a, ((0, rows - a.shape[0]), (0, cols - a.shape[1])))


# ---------------------------------------------------------------------------
# Single fused kernel: embedding + L GIN layers + batched sum-pool readout.
# No grid; all operands whole-array VMEM resident; layer loop unrolled.
# ---------------------------------------------------------------------------
def ginnet_kernel(
    x_ref,     # [NP, IN_P]        bf16  node features (zero padded)
    a_ref,     # [NP, NP]          bf16  adjacency (no self loops)
    m_ref,     # [GP, NP]          bf16  graph-membership (sum-pool) matrix
    sn_ref,    # [NP, 1]           f32   per-node 1/sqrt(|V_g|)
    we_ref,    # [IN_P, HP]        bf16  embedding weight
    be_ref,    # [1, HP]           f32   embedding bias
    w1_ref,    # [L, HP, HP]       bf16  MLP lin1 (MLP BN folded in)
    b1_ref,    # [L, 1, HP]        f32
    w2_ref,    # [L, HP, HP]       bf16  MLP lin2 (ApplyNodeFunc BN folded in)
    b2_ref,    # [L, 1, HP]        f32
    s3_ref,    # [L, 1, HP]        f32   GINLayer node-BN scale
    t3_ref,    # [L, 1, HP]        f32   GINLayer node-BN shift
    wh_ref,    # [(L+1)*HP, CP]    bf16  concatenated prediction heads
    bh_ref,    # [1, CP]           f32   summed prediction-head biases
    score_ref,  # [GP, CP]         f32   output
    *,
    one_plus_eps,
):
    num_layers = w1_ref.shape[0]

    # Loop-invariant operands: load once, hoisted out of the layer loop.
    a = a_ref[...]
    m = m_ref[...]
    sn = sn_ref[...]

    # Input embedding -> hidden_rep[0]
    h = jnp.dot(x_ref[...], we_ref[...],
                preferred_element_type=jnp.float32) + be_ref[...]
    h_bf = h.astype(jnp.bfloat16)
    hidden_reps = [h_bf]

    # Statically-unrolled GIN layers (weights fully VMEM resident).
    for l in range(num_layers):
        # GIN 'sum' aggregation; self term kept in f32 (exact for any eps).
        z = one_plus_eps * h + jnp.dot(a, h_bf,
                                       preferred_element_type=jnp.float32)
        # MLP lin1 (+ folded BN) + ReLU
        t = jnp.dot(z.astype(jnp.bfloat16), w1_ref[l],
                    preferred_element_type=jnp.float32) + b1_ref[l]
        t = jnp.maximum(t, 0.0)
        # MLP lin2 (+ folded ApplyNodeFunc BN) + ReLU
        t = jnp.dot(t.astype(jnp.bfloat16), w2_ref[l],
                    preferred_element_type=jnp.float32) + b2_ref[l]
        t = jnp.maximum(t, 0.0)
        # graph_norm, node BN, ReLU, residual (dropout == identity in eval)
        t = t * sn
        t = jnp.maximum(t * s3_ref[l] + t3_ref[l], 0.0)
        h = h + t
        h_bf = h.astype(jnp.bfloat16)
        hidden_reps.append(h_bf)

    # Batched readout: ONE pooling matmul + ONE prediction-head matmul.
    #   score = (M @ [h0|...|hL]) @ [W0;...;WL] + sum_i(b_i)
    h_cat = jnp.concatenate(hidden_reps, axis=-1)          # [NP, (L+1)*HP]
    pooled = jnp.dot(m, h_cat, preferred_element_type=jnp.float32)
    score_ref[...] = jnp.dot(pooled.astype(jnp.bfloat16), wh_ref[...],
                             preferred_element_type=jnp.float32) + bh_ref[...]
    # TODO(synk): on v7x, shard node rows across the two TensorCores
    # (pl.core_map) and reduce partial scores; single-core here.


# ---------------------------------------------------------------------------
# pallas_call wrapper
# ---------------------------------------------------------------------------
def ginnet_forward(inp, eps):
    """Runs the fused kernel and returns the padded [GP, CP] score."""
    gp = inp["m"].shape[0]
    cp = inp["wh"].shape[1]

    args = (inp["x"], inp["adj"], inp["m"], inp["snorm"],
            inp["we"], inp["be"],
            inp["w1"], inp["b1"], inp["w2"], inp["b2"],
            inp["bnn_s"], inp["bnn_t"], inp["wh"], inp["bh"])

    vmem_spec = pl.BlockSpec(memory_space=pltpu.MemorySpace.VMEM)

    # Explicit scoped-VMEM budget (default is only 16/32 MiB); everything is
    # single-buffered whole-array resident, so size it from the operands.
    total_bytes = sum(int(a.size) * a.dtype.itemsize for a in args)
    total_bytes += gp * cp * 4
    vmem_limit = int(min(max(4 * total_bytes + (8 << 20), 32 << 20), 64 << 20))

    return pl.pallas_call(
        partial(ginnet_kernel, one_plus_eps=float(1.0 + eps)),
        out_shape=jax.ShapeDtypeStruct((gp, cp), jnp.float32),
        in_specs=[vmem_spec] * len(args),
        out_specs=vmem_spec,
        compiler_params=pltpu.CompilerParams(vmem_limit_bytes=vmem_limit),
    )(*args)


# ---------------------------------------------------------------------------
# Parameter construction (deterministic, synthetic) + host-side fold/pad/stack
# ---------------------------------------------------------------------------
def _linear_params(key, d_in, d_out):
    kw, kb = jax.random.split(key)
    w = jax.random.normal(kw, (d_in, d_out), jnp.float32) * 0.1
    b = jax.random.normal(kb, (1, d_out), jnp.float32) * 0.05
    return w, b


def _bn_fold(key, dim, eps=1e-5):
    kg, kb, km = jax.random.split(key, 3)
    gamma = 1.0 + 0.1 * jax.random.normal(kg, (1, dim), jnp.float32)
    beta = 0.05 * jax.random.normal(kb, (1, dim), jnp.float32)
    mean = 0.05 * jax.random.normal(km, (1, dim), jnp.float32)
    var = jnp.ones((1, dim), jnp.float32)
    scale = gamma / jnp.sqrt(var + eps)
    shift = beta - mean * scale
    return scale, shift


def make_params(key, in_dim, hidden, n_classes, n_layers):
    keys = jax.random.split(key, 1 + 5 * n_layers + (n_layers + 1))
    ki = iter(keys)
    params = {}
    params["emb_w"], params["emb_b"] = _linear_params(next(ki), in_dim, hidden)
    params["layers"] = []
    for _ in range(n_layers):
        p = {}
        p["w1"], p["b1"] = _linear_params(next(ki), hidden, hidden)
        p["bn1_s"], p["bn1_t"] = _bn_fold(next(ki), hidden)
        p["w2"], p["b2"] = _linear_params(next(ki), hidden, hidden)
        p["bna_s"], p["bna_t"] = _bn_fold(next(ki), hidden)
        p["bnn_s"], p["bnn_t"] = _bn_fold(next(ki), hidden)
        params["layers"].append(p)
    params["pred"] = [_linear_params(next(ki), hidden, n_classes)
                      for _ in range(n_layers + 1)]
    return params


def prepare_inputs(params, adj, member, x, snorm, n_layers):
    """Fold eval-mode BN, pad to lane/MXU-dense shapes, stack per-layer
    params, concatenate prediction heads, cast matmul operands to bf16."""
    n, in_dim = x.shape
    hidden = params["emb_w"].shape[1]
    n_classes = params["pred"][0][0].shape[1]
    g = member.shape[0]

    np_ = _rup(n, NODE_PAD)
    in_p = _rup(in_dim, LANE)
    hp = _rup(hidden, LANE)
    cp = _rup(n_classes, LANE)
    gp = _rup(g, SUBLANE)

    inp = {
        "x": _pad2(x, np_, in_p).astype(jnp.bfloat16),
        "adj": _pad2(adj, np_, np_).astype(jnp.bfloat16),
        "m": _pad2(member, gp, np_).astype(jnp.bfloat16),
        "snorm": _pad2(snorm, np_, 1),
        "we": _pad2(params["emb_w"], in_p, hp).astype(jnp.bfloat16),
        "be": _pad2(params["emb_b"], 1, hp),
    }

    w1s, b1s, w2s, b2s, s3s, t3s = ([] for _ in range(6))
    for i in range(n_layers):
        p = params["layers"][i]
        # Fold MLP BN into lin1, ApplyNodeFunc BN into lin2 (eval-mode BN).
        w1f = p["w1"] * p["bn1_s"]
        b1f = p["b1"] * p["bn1_s"] + p["bn1_t"]
        w2f = p["w2"] * p["bna_s"]
        b2f = p["b2"] * p["bna_s"] + p["bna_t"]
        w1s.append(_pad2(w1f, hp, hp))
        b1s.append(_pad2(b1f, 1, hp))
        w2s.append(_pad2(w2f, hp, hp))
        b2s.append(_pad2(b2f, 1, hp))
        s3s.append(_pad2(p["bnn_s"], 1, hp))
        t3s.append(_pad2(p["bnn_t"], 1, hp))

    inp["w1"] = jnp.stack(w1s).astype(jnp.bfloat16)
    inp["b1"] = jnp.stack(b1s)
    inp["w2"] = jnp.stack(w2s).astype(jnp.bfloat16)
    inp["b2"] = jnp.stack(b2s)
    inp["bnn_s"] = jnp.stack(s3s)
    inp["bnn_t"] = jnp.stack(t3s)

    # Concatenated prediction heads (row blocks ordered hidden_rep[0..L]) and
    # summed biases: score = [pooled_0|...|pooled_L] @ Wh + sum_i(b_i).
    wh = jnp.concatenate([_pad2(w, hp, cp) for (w, _) in params["pred"]],
                         axis=0)
    bh = sum(_pad2(b, 1, cp) for (_, b) in params["pred"])
    inp["wh"] = wh.astype(jnp.bfloat16)
    inp["bh"] = bh
    return inp


# ---------------------------------------------------------------------------
# Pure-JAX f32 reference (unfused, unfolded, unpadded) for validation
# ---------------------------------------------------------------------------
def reference_forward(params, adj, member, x, snorm, eps, n_layers):
    h = x @ params["emb_w"] + params["emb_b"]
    hidden_rep = [h]
    for i in range(n_layers):
        p = params["layers"][i]
        z = (1.0 + eps) * h + adj @ h
        t = jnp.maximum((z @ p["w1"] + p["b1"]) * p["bn1_s"] + p["bn1_t"], 0.0)
        t = jnp.maximum((t @ p["w2"] + p["b2"]) * p["bna_s"] + p["bna_t"], 0.0)
        t = t * snorm
        t = jnp.maximum(t * p["bnn_s"] + p["bnn_t"], 0.0)
        h = h + t
        hidden_rep.append(h)
    score = 0.0
    for i, hr in enumerate(hidden_rep):
        w, b = params["pred"][i]
        score = score + (member @ hr) @ w + b
    return score


# ---------------------------------------------------------------------------
if __name__ == "__main__":
    IN_DIM = 16
    HIDDEN = 32
    N_CLASSES = 8
    L = 3                     # number of GIN layers
    G = 2                     # graphs in the batch
    NODES_PER_GRAPH = 16
    N = G * NODES_PER_GRAPH   # total nodes

    key = jax.random.PRNGKey(0)
    k_feat, k_adj, k_params = jax.random.split(key, 3)

    nodes_feat = jax.random.normal(k_feat, (N, IN_DIM), jnp.float32)

    # block-diagonal symmetric adjacency (2 graphs of 16 nodes, no self loops)
    blocks = []
    for g in range(G):
        kg = jax.random.fold_in(k_adj, g)
        a = (jax.random.uniform(kg, (NODES_PER_GRAPH, NODES_PER_GRAPH)) < 0.3)
        a = a.astype(jnp.float32)
        a = jnp.maximum(a, a.T)
        a = a * (1.0 - jnp.eye(NODES_PER_GRAPH, dtype=jnp.float32))
        blocks.append(a)
    adj = jax.scipy.linalg.block_diag(*blocks).astype(jnp.float32)

    # graph-membership matrix for SumPooling readout
    member = jnp.zeros((G, N), jnp.float32)
    for g in range(G):
        member = member.at[g, g * NODES_PER_GRAPH:(g + 1) * NODES_PER_GRAPH].set(1.0)

    # nodes_num_norm_sqrt: per-node 1/sqrt(|V_g|)
    snorm_n = jnp.full((N, 1), 1.0 / jnp.sqrt(float(NODES_PER_GRAPH)), jnp.float32)

    eps = 0.0   # learn_eps_GIN = False, init eps = 0 (shared by all layers)

    params = make_params(k_params, IN_DIM, HIDDEN, N_CLASSES, L)
    inp = prepare_inputs(params, adj, member, nodes_feat, snorm_n, L)

    # TODO(synk): dropout is identity in eval mode; training-mode dropout is
    # not implemented.
    score_padded = jax.block_until_ready(ginnet_forward(inp, eps))
    score = score_padded[:G, :N_CLASSES]

    ref = reference_forward(params, adj, member, nodes_feat, snorm_n, eps, L)

    assert score.shape == (G, N_CLASSES)
    assert jnp.all(jnp.isfinite(score))
    rel_err = float(jnp.max(jnp.abs(score - ref)) /
                    (jnp.max(jnp.abs(ref)) + 1e-6))
    assert rel_err < 0.05, f"kernel deviates from f32 reference: {rel_err}"
    print("KERNEL_OK")
</pallas_src>

<mosaic_0001>
module attributes {stable_mosaic.version = 11 : i64} {
  func.func @ginnet_kernel(%arg0: memref<128x128xbf16, #tpu.memory_space<vmem>>, %arg1: memref<128x128xbf16, #tpu.memory_space<vmem>>, %arg2: memref<8x128xbf16, #tpu.memory_space<vmem>>, %arg3: memref<128x1xf32, #tpu.memory_space<vmem>>, %arg4: memref<128x128xbf16, #tpu.memory_space<vmem>>, %arg5: memref<1x128xf32, #tpu.memory_space<vmem>>, %arg6: memref<3x128x128xbf16, #tpu.memory_space<vmem>>, %arg7: memref<3x1x128xf32, #tpu.memory_space<vmem>>, %arg8: memref<3x128x128xbf16, #tpu.memory_space<vmem>>, %arg9: memref<3x1x128xf32, #tpu.memory_space<vmem>>, %arg10: memref<3x1x128xf32, #tpu.memory_space<vmem>>, %arg11: memref<3x1x128xf32, #tpu.memory_space<vmem>>, %arg12: memref<512x128xbf16, #tpu.memory_space<vmem>>, %arg13: memref<1x128xf32, #tpu.memory_space<vmem>>, %arg14: memref<8x128xf32, #tpu.memory_space<vmem>>) attributes {dimension_semantics = [], scalar_prefetch = 0 : i64, scratch_operands = 0 : i64, tpu.core_type = #tpu.core_type<tc>} {
    %c0 = arith.constant 0 : index
    %c0_0 = arith.constant 0 : index
    %0 = vector.load %arg1[%c0, %c0_0] : memref<128x128xbf16, #tpu.memory_space<vmem>>, vector<128x128xbf16>
    %c0_1 = arith.constant 0 : index
    %c0_2 = arith.constant 0 : index
    %1 = vector.load %arg2[%c0_1, %c0_2] : memref<8x128xbf16, #tpu.memory_space<vmem>>, vector<8x128xbf16>
    %c0_3 = arith.constant 0 : index
    %c0_4 = arith.constant 0 : index
    %2 = vector.load %arg3[%c0_3, %c0_4] : memref<128x1xf32, #tpu.memory_space<vmem>>, vector<128x1xf32>
    %c0_5 = arith.constant 0 : index
    %c0_6 = arith.constant 0 : index
    %3 = vector.load %arg0[%c0_5, %c0_6] : memref<128x128xbf16, #tpu.memory_space<vmem>>, vector<128x128xbf16>
    %c0_7 = arith.constant 0 : index
    %c0_8 = arith.constant 0 : index
    %4 = vector.load %arg4[%c0_7, %c0_8] : memref<128x128xbf16, #tpu.memory_space<vmem>>, vector<128x128xbf16>
    %cst = arith.constant dense<0.000000e+00> : vector<128x128xf32>
    %5 = tpu.matmul %3, %4, %cst {dimension_numbers = #tpu.dot_dimension_numbers<[1], [0], [0], [1], [0, 0, 1, 1], [], []>} : vector<128x128xbf16>, vector<128x128xbf16>, vector<128x128xf32> -> vector<128x128xf32>
    %c0_9 = arith.constant 0 : index
    %c0_10 = arith.constant 0 : index
    %6 = vector.load %arg5[%c0_9, %c0_10] : memref<1x128xf32, #tpu.memory_space<vmem>>, vector<1x128xf32>
    %7 = vector.broadcast %6 : vector<1x128xf32> to vector<128x128xf32>
    %8 = arith.addf %5, %7 : vector<128x128xf32>
    %9 = arith.truncf %8 : vector<128x128xf32> to vector<128x128xbf16>
    %cst_11 = arith.constant 1.000000e+00 : f32
    %10 = vector.broadcast %cst_11 : f32 to vector<128x128xf32>
    %11 = arith.mulf %10, %8 : vector<128x128xf32>
    %cst_12 = arith.constant dense<0.000000e+00> : vector<128x128xf32>
    %12 = tpu.matmul %0, %9, %cst_12 {dimension_numbers = #tpu.dot_dimension_numbers<[1], [0], [0], [1], [0, 0, 1, 1], [], []>} : vector<128x128xbf16>, vector<128x128xbf16>, vector<128x128xf32> -> vector<128x128xf32>
    %13 = arith.addf %11, %12 : vector<128x128xf32>
    %14 = arith.truncf %13 : vector<128x128xf32> to vector<128x128xbf16>
    %c0_13 = arith.constant 0 : index
    %c0_14 = arith.constant 0 : index
    %c0_15 = arith.constant 0 : index
    %15 = vector.load %arg6[%c0_13, %c0_14, %c0_15] : memref<3x128x128xbf16, #tpu.memory_space<vmem>>, vector<1x128x128xbf16>
    %16 = vector.shape_cast %15 : vector<1x128x128xbf16> to vector<128x128xbf16>
    %cst_16 = arith.constant dense<0.000000e+00> : vector<128x128xf32>
    %17 = tpu.matmul %14, %16, %cst_16 {dimension_numbers = #tpu.dot_dimension_numbers<[1], [0], [0], [1], [0, 0, 1, 1], [], []>} : vector<128x128xbf16>, vector<128x128xbf16>, vector<128x128xf32> -> vector<128x128xf32>
    %c0_17 = arith.constant 0 : index
    %c0_18 = arith.constant 0 : index
    %c0_19 = arith.constant 0 : index
    %18 = vector.load %arg7[%c0_17, %c0_18, %c0_19] : memref<3x1x128xf32, #tpu.memory_space<vmem>>, vector<1x1x128xf32>
    %19 = vector.shape_cast %18 : vector<1x1x128xf32> to vector<1x128xf32>
    %20 = vector.broadcast %19 : vector<1x128xf32> to vector<128x128xf32>
    %21 = arith.addf %17, %20 : vector<128x128xf32>
    %cst_20 = arith.constant 0.000000e+00 : f32
    %22 = vector.broadcast %cst_20 : f32 to vector<128x128xf32>
    %23 = arith.maximumf %21, %22 : vector<128x128xf32>
    %24 = arith.truncf %23 : vector<128x128xf32> to vector<128x128xbf16>
    %c0_21 = arith.constant 0 : index
    %c0_22 = arith.constant 0 : index
    %c0_23 = arith.constant 0 : index
    %25 = vector.load %arg8[%c0_21, %c0_22, %c0_23] : memref<3x128x128xbf16, #tpu.memory_space<vmem>>, vector<1x128x128xbf16>
    %26 = vector.shape_cast %25 : vector<1x128x128xbf16> to vector<128x128xbf16>
    %cst_24 = arith.constant dense<0.000000e+00> : vector<128x128xf32>
    %27 = tpu.matmul %24, %26, %cst_24 {dimension_numbers = #tpu.dot_dimension_numbers<[1], [0], [0], [1], [0, 0, 1, 1], [], []>} : vector<128x128xbf16>, vector<128x128xbf16>, vector<128x128xf32> -> vector<128x128xf32>
    %c0_25 = arith.constant 0 : index
    %c0_26 = arith.constant 0 : index
    %c0_27 = arith.constant 0 : index
    %28 = vector.load %arg9[%c0_25, %c0_26, %c0_27] : memref<3x1x128xf32, #tpu.memory_space<vmem>>, vector<1x1x128xf32>
    %29 = vector.shape_cast %28 : vector<1x1x128xf32> to vector<1x128xf32>
    %30 = vector.broadcast %29 : vector<1x128xf32> to vector<128x128xf32>
    %31 = arith.addf %27, %30 : vector<128x128xf32>
    %cst_28 = arith.constant 0.000000e+00 : f32
    %32 = vector.broadcast %cst_28 : f32 to vector<128x128xf32>
    %33 = arith.maximumf %31, %32 : vector<128x128xf32>
    %34 = vector.broadcast %2 : vector<128x1xf32> to vector<128x128xf32>
    %35 = arith.mulf %33, %34 : vector<128x128xf32>
    %c0_29 = arith.constant 0 : index
    %c0_30 = arith.constant 0 : index
    %c0_31 = arith.constant 0 : index
    %36 = vector.load %arg10[%c0_29, %c0_30, %c0_31] : memref<3x1x128xf32, #tpu.memory_space<vmem>>, vector<1x1x128xf32>
    %37 = vector.shape_cast %36 : vector<1x1x128xf32> to vector<1x128xf32>
    %38 = vector.broadcast %37 : vector<1x128xf32> to vector<128x128xf32>
    %39 = arith.mulf %35, %38 : vector<128x128xf32>
    %c0_32 = arith.constant 0 : index
    %c0_33 = arith.constant 0 : index
    %c0_34 = arith.constant 0 : index
    %40 = vector.load %arg11[%c0_32, %c0_33, %c0_34] : memref<3x1x128xf32, #tpu.memory_space<vmem>>, vector<1x1x128xf32>
    %41 = vector.shape_cast %40 : vector<1x1x128xf32> to vector<1x128xf32>
    %42 = vector.broadcast %41 : vector<1x128xf32> to vector<128x128xf32>
    %43 = arith.addf %39, %42 : vector<128x128xf32>
    %cst_35 = arith.constant 0.000000e+00 : f32
    %44 = vector.broadcast %cst_35 : f32 to vector<128x128xf32>
    %45 = arith.maximumf %43, %44 : vector<128x128xf32>
    %46 = arith.addf %8, %45 : vector<128x128xf32>
    %47 = arith.truncf %46 : vector<128x128xf32> to vector<128x128xbf16>
    %cst_36 = arith.constant 1.000000e+00 : f32
    %48 = vector.broadcast %cst_36 : f32 to vector<128x128xf32>
    %49 = arith.mulf %48, %46 : vector<128x128xf32>
    %cst_37 = arith.constant dense<0.000000e+00> : vector<128x128xf32>
    %50 = tpu.matmul %0, %47, %cst_37 {dimension_numbers = #tpu.dot_dimension_numbers<[1], [0], [0], [1], [0, 0, 1, 1], [], []>} : vector<128x128xbf16>, vector<128x128xbf16>, vector<128x128xf32> -> vector<128x128xf32>
    %51 = arith.addf %49, %50 : vector<128x128xf32>
    %52 = arith.truncf %51 : vector<128x128xf32> to vector<128x128xbf16>
    %c1 = arith.constant 1 : index
    %c0_38 = arith.constant 0 : index
    %c0_39 = arith.constant 0 : index
    %53 = vector.load %arg6[%c1, %c0_38, %c0_39] : memref<3x128x128xbf16, #tpu.memory_space<vmem>>, vector<1x128x128xbf16>
    %54 = vector.shape_cast %53 : vector<1x128x128xbf16> to vector<128x128xbf16>
    %cst_40 = arith.constant dense<0.000000e+00> : vector<128x128xf32>
    %55 = tpu.matmul %52, %54, %cst_40 {dimension_numbers = #tpu.dot_dimension_numbers<[1], [0], [0], [1], [0, 0, 1, 1], [], []>} : vector<128x128xbf16>, vector<128x128xbf16>, vector<128x128xf32> -> vector<128x128xf32>
    %c1_41 = arith.constant 1 : index
    %c0_42 = arith.constant 0 : index
    %c0_43 = arith.constant 0 : index
    %56 = vector.load %arg7[%c1_41, %c0_42, %c0_43] : memref<3x1x128xf32, #tpu.memory_space<vmem>>, vector<1x1x128xf32>
    %57 = vector.shape_cast %56 : vector<1x1x128xf32> to vector<1x128xf32>
    %58 = vector.broadcast %57 : vector<1x128xf32> to vector<128x128xf32>
    %59 = arith.addf %55, %58 : vector<128x128xf32>
    %cst_44 = arith.constant 0.000000e+00 : f32
    %60 = vector.broadcast %cst_44 : f32 to vector<128x128xf32>
    %61 = arith.maximumf %59, %60 : vector<128x128xf32>
    %62 = arith.truncf %61 : vector<128x128xf32> to vector<128x128xbf16>
    %c1_45 = arith.constant 1 : index
    %c0_46 = arith.constant 0 : index
    %c0_47 = arith.constant 0 : index
    %63 = vector.load %arg8[%c1_45, %c0_46, %c0_47] : memref<3x128x128xbf16, #tpu.memory_space<vmem>>, vector<1x128x128xbf16>
    %64 = vector.shape_cast %63 : vector<1x128x128xbf16> to vector<128x128xbf16>
    %cst_48 = arith.constant dense<0.000000e+00> : vector<128x128xf32>
    %65 = tpu.matmul %62, %64, %cst_48 {dimension_numbers = #tpu.dot_dimension_numbers<[1], [0], [0], [1], [0, 0, 1, 1], [], []>} : vector<128x128xbf16>, vector<128x128xbf16>, vector<128x128xf32> -> vector<128x128xf32>
    %c1_49 = arith.constant 1 : index
    %c0_50 = arith.constant 0 : index
    %c0_51 = arith.constant 0 : index
    %66 = vector.load %arg9[%c1_49, %c0_50, %c0_51] : memref<3x1x128xf32, #tpu.memory_space<vmem>>, vector<1x1x128xf32>
    %67 = vector.shape_cast %66 : vector<1x1x128xf32> to vector<1x128xf32>
    %68 = vector.broadcast %67 : vector<1x128xf32> to vector<128x128xf32>
    %69 = arith.addf %65, %68 : vector<128x128xf32>
    %cst_52 = arith.constant 0.000000e+00 : f32
    %70 = vector.broadcast %cst_52 : f32 to vector<128x128xf32>
    %71 = arith.maximumf %69, %70 : vector<128x128xf32>
    %72 = vector.broadcast %2 : vector<128x1xf32> to vector<128x128xf32>
    %73 = arith.mulf %71, %72 : vector<128x128xf32>
    %c1_53 = arith.constant 1 : index
    %c0_54 = arith.constant 0 : index
    %c0_55 = arith.constant 0 : index
    %74 = vector.load %arg10[%c1_53, %c0_54, %c0_55] : memref<3x1x128xf32, #tpu.memory_space<vmem>>, vector<1x1x128xf32>
    %75 = vector.shape_cast %74 : vector<1x1x128xf32> to vector<1x128xf32>
    %76 = vector.broadcast %75 : vector<1x128xf32> to vector<128x128xf32>
    %77 = arith.mulf %73, %76 : vector<128x128xf32>
    %c1_56 = arith.constant 1 : index
    %c0_57 = arith.constant 0 : index
    %c0_58 = arith.constant 0 : index
    %78 = vector.load %arg11[%c1_56, %c0_57, %c0_58] : memref<3x1x128xf32, #tpu.memory_space<vmem>>, vector<1x1x128xf32>
    %79 = vector.shape_cast %78 : vector<1x1x128xf32> to vector<1x128xf32>
    %80 = vector.broadcast %79 : vector<1x128xf32> to vector<128x128xf32>
    %81 = arith.addf %77, %80 : vector<128x128xf32>
    %cst_59 = arith.constant 0.000000e+00 : f32
    %82 = vector.broadcast %cst_59 : f32 to vector<128x128xf32>
    %83 = arith.maximumf %81, %82 : vector<128x128xf32>
    %84 = arith.addf %46, %83 : vector<128x128xf32>
    %85 = arith.truncf %84 : vector<128x128xf32> to vector<128x128xbf16>
    %cst_60 = arith.constant 1.000000e+00 : f32
    %86 = vector.broadcast %cst_60 : f32 to vector<128x128xf32>
    %87 = arith.mulf %86, %84 : vector<128x128xf32>
    %cst_61 = arith.constant dense<0.000000e+00> : vector<128x128xf32>
    %88 = tpu.matmul %0, %85, %cst_61 {dimension_numbers = #tpu.dot_dimension_numbers<[1], [0], [0], [1], [0, 0, 1, 1], [], []>} : vector<128x128xbf16>, vector<128x128xbf16>, vector<128x128xf32> -> vector<128x128xf32>
    %89 = arith.addf %87, %88 : vector<128x128xf32>
    %90 = arith.truncf %89 : vector<128x128xf32> to vector<128x128xbf16>
    %c2 = arith.constant 2 : index
    %c0_62 = arith.constant 0 : index
    %c0_63 = arith.constant 0 : index
    %91 = vector.load %arg6[%c2, %c0_62, %c0_63] : memref<3x128x128xbf16, #tpu.memory_space<vmem>>, vector<1x128x128xbf16>
    %92 = vector.shape_cast %91 : vector<1x128x128xbf16> to vector<128x128xbf16>
    %cst_64 = arith.constant dense<0.000000e+00> : vector<128x128xf32>
    %93 = tpu.matmul %90, %92, %cst_64 {dimension_numbers = #tpu.dot_dimension_numbers<[1], [0], [0], [1], [0, 0, 1, 1], [], []>} : vector<128x128xbf16>, vector<128x128xbf16>, vector<128x128xf32> -> vector<128x128xf32>
    %c2_65 = arith.constant 2 : index
    %c0_66 = arith.constant 0 : index
    %c0_67 = arith.constant 0 : index
    %94 = vector.load %arg7[%c2_65, %c0_66, %c0_67] : memref<3x1x128xf32, #tpu.memory_space<vmem>>, vector<1x1x128xf32>
    %95 = vector.shape_cast %94 : vector<1x1x128xf32> to vector<1x128xf32>
    %96 = vector.broadcast %95 : vector<1x128xf32> to vector<128x128xf32>
    %97 = arith.addf %93, %96 : vector<128x128xf32>
    %cst_68 = arith.constant 0.000000e+00 : f32
    %98 = vector.broadcast %cst_68 : f32 to vector<128x128xf32>
    %99 = arith.maximumf %97, %98 : vector<128x128xf32>
    %100 = arith.truncf %99 : vector<128x128xf32> to vector<128x128xbf16>
    %c2_69 = arith.constant 2 : index
    %c0_70 = arith.constant 0 : index
    %c0_71 = arith.constant 0 : index
    %101 = vector.load %arg8[%c2_69, %c0_70, %c0_71] : memref<3x128x128xbf16, #tpu.memory_space<vmem>>, vector<1x128x128xbf16>
    %102 = vector.shape_cast %101 : vector<1x128x128xbf16> to vector<128x128xbf16>
    %cst_72 = arith.constant dense<0.000000e+00> : vector<128x128xf32>
    %103 = tpu.matmul %100, %102, %cst_72 {dimension_numbers = #tpu.dot_dimension_numbers<[1], [0], [0], [1], [0, 0, 1, 1], [], []>} : vector<128x128xbf16>, vector<128x128xbf16>, vector<128x128xf32> -> vector<128x128xf32>
    %c2_73 = arith.constant 2 : index
    %c0_74 = arith.constant 0 : index
    %c0_75 = arith.constant 0 : index
    %104 = vector.load %arg9[%c2_73, %c0_74, %c0_75] : memref<3x1x128xf32, #tpu.memory_space<vmem>>, vector<1x1x128xf32>
    %105 = vector.shape_cast %104 : vector<1x1x128xf32> to vector<1x128xf32>
    %106 = vector.broadcast %105 : vector<1x128xf32> to vector<128x128xf32>
    %107 = arith.addf %103, %106 : vector<128x128xf32>
    %cst_76 = arith.constant 0.000000e+00 : f32
    %108 = vector.broadcast %cst_76 : f32 to vector<128x128xf32>
    %109 = arith.maximumf %107, %108 : vector<128x128xf32>
    %110 = vector.broadcast %2 : vector<128x1xf32> to vector<128x128xf32>
    %111 = arith.mulf %109, %110 : vector<128x128xf32>
    %c2_77 = arith.constant 2 : index
    %c0_78 = arith.constant 0 : index
    %c0_79 = arith.constant 0 : index
    %112 = vector.load %arg10[%c2_77, %c0_78, %c0_79] : memref<3x1x128xf32, #tpu.memory_space<vmem>>, vector<1x1x128xf32>
    %113 = vector.shape_cast %112 : vector<1x1x128xf32> to vector<1x128xf32>
    %114 = vector.broadcast %113 : vector<1x128xf32> to vector<128x128xf32>
    %115 = arith.mulf %111, %114 : vector<128x128xf32>
    %c2_80 = arith.constant 2 : index
    %c0_81 = arith.constant 0 : index
    %c0_82 = arith.constant 0 : index
    %116 = vector.load %arg11[%c2_80, %c0_81, %c0_82] : memref<3x1x128xf32, #tpu.memory_space<vmem>>, vector<1x1x128xf32>
    %117 = vector.shape_cast %116 : vector<1x1x128xf32> to vector<1x128xf32>
    %118 = vector.broadcast %117 : vector<1x128xf32> to vector<128x128xf32>
    %119 = arith.addf %115, %118 : vector<128x128xf32>
    %cst_83 = arith.constant 0.000000e+00 : f32
    %120 = vector.broadcast %cst_83 : f32 to vector<128x128xf32>
    %121 = arith.maximumf %119, %120 : vector<128x128xf32>
    %122 = arith.addf %84, %121 : vector<128x128xf32>
    %123 = arith.truncf %122 : vector<128x128xf32> to vector<128x128xbf16>
    %124 = tpu.concatenate %9, %47, %85, %123 in 1 : vector<128x128xbf16>, vector<128x128xbf16>, vector<128x128xbf16>, vector<128x128xbf16> -> vector<128x512xbf16>
    %cst_84 = arith.constant dense<0.000000e+00> : vector<8x512xf32>
    %125 = tpu.matmul %1, %124, %cst_84 {dimension_numbers = #tpu.dot_dimension_numbers<[1], [0], [0], [1], [0, 0, 1, 1], [], []>} : vector<8x128xbf16>, vector<128x512xbf16>, vector<8x512xf32> -> vector<8x512xf32>
    %126 = arith.truncf %125 : vector<8x512xf32> to vector<8x512xbf16>
    %c0_85 = arith.constant 0 : index
    %c0_86 = arith.constant 0 : index
    %127 = vector.load %arg12[%c0_85, %c0_86] : memref<512x128xbf16, #tpu.memory_space<vmem>>, vector<512x128xbf16>
    %cst_87 = arith.constant dense<0.000000e+00> : vector<8x128xf32>
    %128 = tpu.matmul %126, %127, %cst_87 {dimension_numbers = #tpu.dot_dimension_numbers<[1], [0], [0], [1], [0, 0, 1, 1], [], []>} : vector<8x512xbf16>, vector<512x128xbf16>, vector<8x128xf32> -> vector<8x128xf32>
    %c0_88 = arith.constant 0 : index
    %c0_89 = arith.constant 0 : index
    %129 = vector.load %arg13[%c0_88, %c0_89] : memref<1x128xf32, #tpu.memory_space<vmem>>, vector<1x128xf32>
    %130 = vector.broadcast %129 : vector<1x128xf32> to vector<8x128xf32>
    %131 = arith.addf %128, %130 : vector<8x128xf32>
    %c0_90 = arith.constant 0 : index
    %c0_91 = arith.constant 0 : index
    %132 = vector.load %arg14[%c0_90, %c0_91] : memref<8x128xf32, #tpu.memory_space<vmem>>, vector<8x128xf32>
    tpu.vector_store %arg14[%c0_90, %c0_91], %131 {strides = array<i32>} : memref<8x128xf32, #tpu.memory_space<vmem>>, vector<8x128xf32>,
    return
  }
}

</mosaic_0001>

<bundles_post_ra>
// kernel: tpu_custom_call.1
= control target key start
LH: loop header
LB: loop body
LE: loop exit
PB: predicated region body
PF: predicated region fallthrough
CT: control target
= control target key end

     0   :  { %19 = vsyncpa [#allocation3], 0  ;;  %s4183_s0 = inlined_call_operand.vmem [shape: bf16[128,128], index: 0, kind: input, shape index: {}]   ;;  %s4184_s1 = inlined_call_operand.vmem [shape: bf16[128,128], index: 1, kind: input, shape index: {}]   ;;  %s4185_s2 = inlined_call_operand.hbm [shape: bf16[8,128], index: 2, kind: input, shape index: {}]   ;;  %s4186_s3 = inlined_call_operand.vmem [shape: f32[128,1], index: 3, kind: input, shape index: {}]   ;;  %s4187_s4 = inlined_call_operand.hbm [shape: bf16[128,128], index: 4, kind: input, shape index: {}]   ;;  %s4188_s5 = inlined_call_operand.vmem [shape: f32[1,128], index: 5, kind: input, shape index: {}]   ;;  %s4189_s6 = inlined_call_operand.hbm [shape: bf16[3,128,128], index: 6, kind: input, shape index: {}]   ;;  %s4190_s7 = inlined_call_operand.vmem [shape: f32[3,1,128], index: 7, kind: input, shape index: {}]   ;;  %s4191_s8 = inlined_call_operand.hbm [shape: bf16[3,128,128], index: 8, kind: input, shape index: {}]   ;;  %s4192_s9 = inlined_call_operand.vmem [shape: f32[3,1,128], index: 9, kind: input, shape index: {}]   ;;  %s4193_s10 = inlined_call_operand.hbm [shape: f32[3,1,128], index: 10, kind: input, shape index: {}]   ;;  %s4194_s11 = inlined_call_operand.hbm [shape: f32[3,1,128], index: 11, kind: input, shape index: {}]   ;;  %s4195_s12 = inlined_call_operand.hbm [shape: bf16[512,128], index: 12, kind: input, shape index: {}]   ;;  %s4196_s13 = inlined_call_operand.vmem [shape: f32[1,128], index: 13, kind: input, shape index: {}]   ;;  %s4197_s14 = inlined_call_operand.hbm [shape: f32[8,128], index: 14, kind: output, shape index: {}]  }
   0x1   :  { %20 = vsyncpa [#allocation6], 0 }
   0x2   :  { %21 = vsyncpa [#allocation9], 0 }
   0x3   :  { %22 = vsyncpa [#allocation12], 0  ;;  %s45_s15 = sshll.u32 %s4187_s4, 4  ;;  %s46_s15 = int_to_ptr.hbm [resolvable:$true] %s45_s15 }
   0x4   :  { %23 = vsyncpa [#allocation4], 0  ;;  %s3223_s16 = smov [#allocation5]   ;;  %s75_s20 = sshll.u32 %s4191_s8, 4  ;;  %s76_s20 = int_to_ptr.hbm [resolvable:$true] %s75_s20 }
   0x5   :  { %s47_s17 = sshll.u32 %s3223_s16, 4  ;;  %s3224_s21 = smov 64   ;;  %s48_s17 = int_to_ptr.vmem [resolvable:$true] %s47_s17 }
   0x6   :  { %s3225_s22 = smov 4   ;;  %s3226_s23 = smov [#allocation8]  }
   0x7   :  { %53 = dma.hbm_to_vmem [thread:$0]  %s46_s15, 1024, %s48_s17, [#allocation6], %s3224_s21, %s3224_s21, %s3225_s22  }
   0x8   :  { %s77_s24 = sshll.u32 %s3226_s23, 4  ;;  %s103_s26 = sshll.u32 %s4194_s11, 4  ;;  %s78_s24 = int_to_ptr.vmem [resolvable:$true] %s77_s24  ;;  %s104_s26 = int_to_ptr.hbm [resolvable:$true] %s103_s26 }
   0x9   :  { %83 = dma.hbm_to_vmem [thread:$0]  %s76_s20, 3072, %s78_s24, [#allocation9], %s3224_s21, %s3224_s21, %s3225_s22  }
   0xa   :  { %s3227_s8 = smov [#allocation11]   ;;  %s33_s30 = sshll.u32 %s4185_s2, 4  ;;  %s34_s30 = int_to_ptr.hbm [resolvable:$true] %s33_s30 }
   0xb   :  { %s105_s27 = sshll.u32 %s3227_s8, 4  ;;  %s3228_s15 = smov 16   ;;  %s106_s27 = int_to_ptr.vmem [resolvable:$true] %s105_s27 }
   0xc   :  { %s3229_s16 = smov 1   ;;  %s3230_s17 = smov [#allocation2]  }
   0xd   :  { %111 = dma.hbm_to_vmem [thread:$0]  %s104_s26, 48, %s106_s27, [#allocation12], %s3228_s15, %s3228_s15, %s3229_s16  }
   0xe   :  { %s35_s18 = sshll.u32 %s3230_s17, 4  ;;  %s60_s23 = sshll.u32 %s4189_s6, 4  ;;  %s36_s18 = int_to_ptr.vmem [resolvable:$true] %s35_s18  ;;  %s61_s23 = int_to_ptr.hbm [resolvable:$true] %s60_s23 }
   0xf   :  { %38 = dma.hbm_to_vmem [thread:$0]  %s34_s30, 64, %s36_s18, [#allocation3]  }
  0x10   :  { %s90_s4 = sshll.u32 %s4193_s10, 4  ;;  %s3231_s25 = smov [#allocation7]   ;;  %s91_s4 = int_to_ptr.hbm [resolvable:$true] %s90_s4 }
  0x11   :  { %s62_s8 = sshll.u32 %s3231_s25, 4  ;;  %s3232_s2 = smov [#allocation10]   ;;  %s63_s8 = int_to_ptr.vmem [resolvable:$true] %s62_s8 }
  0x12   :  { %68 = dma.hbm_to_vmem [thread:$0]  %s61_s23, 3072, %s63_s8, [#allocation6], %s3224_s21, %s3224_s21, %s3225_s22  }
  0x13   :  { %s92_s26 = sshll.u32 %s3232_s2, 4  ;;  %s116_s6 = sshll.u32 %s4195_s12, 4  ;;  %s93_s26 = int_to_ptr.vmem [resolvable:$true] %s92_s26  ;;  %s117_s6 = int_to_ptr.hbm [resolvable:$true] %s116_s6 }
  0x14   :  { %98 = dma.hbm_to_vmem [thread:$0]  %s91_s4, 48, %s93_s26, [#allocation9], %s3228_s15, %s3228_s15, %s3229_s16  }
  0x15   :  { %s3233_s29 = smov [#allocation13]  }
  0x16   :  { %s118_s30 = sshll.u32 %s3233_s29, 4  ;;  %s119_s30 = int_to_ptr.vmem [resolvable:$true] %s118_s30 }
  0x17   :  { %124 = dma.hbm_to_vmem [thread:$0]  %s117_s6, 4096, %s119_s30, [#allocation12], %s3224_s21, %s3224_s21, %s3225_s22  }
  0x18   :  { %3213 = dma.done.wait [#allocation3], 64  }
  0x19   :  { %3214 = vsyncadd [#allocation3], 4294967232 }
  0x1a   :  { %3215 = dma.done.wait [#allocation6], 4096  }
  0x1b   :  { %3216 = vsyncadd [#allocation6], 4294963200 }
  0x1c   :  { %3217 = dma.done.wait [#allocation9], 3120  }
  0x1d   :  { %3218 = vsyncadd [#allocation9], 4294964176 }
  0x1e   :  { %3219 = dma.done.wait [#allocation12], 4144  }
  0x1f   :  { %3220 = vsyncadd [#allocation12], 4294963152  ;;  %v2902_v0 = vld [vmem:[#allocation5 + $0x38] sm:$0xff]  ;;  %v2901_v1 = vld [vmem:[#allocation5 + $0x30] sm:$0xff]  ;;  %s3235_s26 = smov [#allocation14]   ;;  %s2446_s27 = sshll.u32 %s4197_s14, 4  ;;  %s2447_s27 = int_to_ptr.hbm [resolvable:$true] %s2446_s27 }
  0x20   :  { %320 = vmatpush.bf16.msra.mxu0 %v2902_v0  ;;  %v2900_v2 = vld [vmem:[#allocation5 + $0x28] sm:$0xff]  ;;  %v2899_v3 = vld [vmem:[#allocation5 + $0x20] sm:$0xff]  ;;  %v2898_v4 = vld [vmem:[#allocation5 + $0x18] sm:$0xff] }
  0x21   :  { %v2897_v5 = vld [vmem:[#allocation5 + $0x10] sm:$0xff]  ;;  %v2896_v6 = vld [vmem:[#allocation5 + $0x8] sm:$0xff]  ;;  %v2895_v7 = vld [vmem:[#allocation5] sm:$0xff] }
  0x22   :  { %v2887_v8 = vld [vmem:[%s4183_s0] sm:$0xff]  ;;  %v2888_v9 = vld [vmem:[%s4183_s0 + $0x8] sm:$0xff]  ;;  %v2889_v10 = vld [vmem:[%s4183_s0 + $0x10] sm:$0xff] }
  0x23   :  { %v2890_v11 = vld [vmem:[%s4183_s0 + $0x18] sm:$0xff]  ;;  %v2891_v12 = vld [vmem:[%s4183_s0 + $0x20] sm:$0xff]  ;;  %v2892_v13 = vld [vmem:[%s4183_s0 + $0x28] sm:$0xff] }
  0x24   :  { %321 = vmatpush.bf16.msra.mxu0 %v2901_v1  ;;  %v2893_v14 = vld [vmem:[%s4183_s0 + $0x30] sm:$0xff]  ;;  %v2894_v15 = vld [vmem:[%s4183_s0 + $0x38] sm:$0xff]  ;;  %v2999_v31 = vld [vmem:[%s4188_s5] ss:$0 sm:$0xff] }
  0x28   :  { %322 = vmatpush.bf16.msra.mxu0 %v2900_v2 }
  0x2c   :  { %323 = vmatpush.bf16.msra.mxu0 %v2899_v3 }
  0x30   :  { %324 = vmatpush.bf16.msra.mxu0 %v2898_v4 }
  0x34   :  { %325 = vmatpush.bf16.msra.mxu0 %v2897_v5 }
  0x38   :  { %326 = vmatpush.bf16.msra.mxu0 %v2896_v6 }
  0x3c   :  { %327 = vmatpush.bf16.msra.mxu0 %v2895_v7 }
  0x3f   :  { %328 = vmatmul.bf16.vlgmr.msra.gmra.mxu0 %v2887_v8 }
  0x4f   :  { %333 = vmatmul.bf16.gmra.mxu0 %v2888_v9 }
  0x5f   :  { %338 = vmatmul.bf16.gmra.mxu0 %v2889_v10 }
  0x6f   :  { %343 = vmatmul.bf16.gmra.mxu0 %v2890_v11 }
  0x7f   :  { %348 = vmatmul.bf16.gmra.mxu0 %v2891_v12 }
  0x8f   :  { %353 = vmatmul.bf16.gmra.mxu0 %v2892_v13 }
  0x9f   :  { %358 = vmatmul.bf16.gmra.mxu0 %v2893_v14 }
  0xaf   :  { %363 = vmatmul.bf16.gmra.mxu0 %v2894_v15 }
  0xbc   :  { %v3368_v16 = vpop.f32.mrf.mxu0 }
  0xbd   :  { %v3444_v13 = vadd.f32 %v2999_v31, %v3368_v16 }
  0xc4   :  { %v331_v17 = vpop.f32.mrf.mxu0 }
  0xc5   :  { %v3437_v9 = vadd.f32 %v2999_v31, %v331_v17 }
  0xc7   :  { %v370_v17 = vpack.c.bf16 %v3437_v9, %v3437_v9 }
  0xcc   :  { %v334_v18 = vpop.f32.mrf.mxu0 }
  0xcd   :  { %v3432_v6 = vadd.f32 %v2999_v31, %v334_v18 }
  0xcf   :  { %v371_v15 = vpack.c.bf16 %v3432_v6, %v3432_v6 }
  0xd4   :  { %v336_v19 = vpop.f32.mrf.mxu0 }
  0xd5   :  { %v3426_v2 = vadd.f32 %v2999_v31, %v336_v19 }
  0xd7   :  { %v372_v12 = vpack.c.bf16 %v3426_v2, %v3426_v2 }
  0xd9   :  { %v452_v19 = vunpack.c.l.b16 %v372_v12 }
  0xdc   :  { %v339_v20 = vpop.f32.mrf.mxu0 }
  0xdd   :  { %v3421_v63 = vadd.f32 %v2999_v31, %v339_v20  ;;  %v451_v20 = vunpack.c.l.b16 %v371_v15 }
  0xdf   :  { %v373_v8 = vpack.c.bf16 %v3421_v63, %v3421_v63  ;;  %v3456_v16 = vpack.c.b16 %v452_v19, %v451_v20 }
  0xe1   :  { %v453_v14 = vunpack.c.l.b16 %v373_v8 }
  0xe4   :  { %v341_v21 = vpop.f32.mrf.mxu0 }
  0xe5   :  { %v3415_v59 = vadd.f32 %v2999_v31, %v341_v21  ;;  %v369_v21 = vpack.c.bf16 %v3444_v13, %v3444_v13 }
  0xe7   :  { %v374_v5 = vpack.c.bf16 %v3415_v59, %v3415_v59 }
  0xe9   :  { %v454_v11 = vunpack.c.l.b16 %v374_v5 }
  0xeb   :  { %v3449_v18 = vpack.c.b16 %v454_v11, %v453_v14 }
  0xec   :  { %v344_v22 = vpop.f32.mrf.mxu0 }
  0xed   :  { %v3410_v56 = vadd.f32 %v2999_v31, %v344_v22  ;;  %v450_v22 = vunpack.c.l.b16 %v370_v17 }
  0xef   :  { %v375_v1 = vpack.c.bf16 %v3410_v56, %v3410_v56 }
  0xf1   :  { %v455_v7 = vunpack.c.l.b16 %v375_v1 }
  0xf4   :  { %v346_v23 = vpop.f32.mrf.mxu0 }
  0xf5   :  { %v3404_v52 = vadd.f32 %v2999_v31, %v346_v23  ;;  %v449_v23 = vunpack.c.l.b16 %v369_v21 }
  0xf7   :  { %v376_v62 = vpack.c.bf16 %v3404_v52, %v3404_v52 }
  0xf9   :  { %v456_v4 = vunpack.c.l.b16 %v376_v62  ;;  %v3507_v62 = vld [vmem:[%s4184_s1 + $0x38] sm:$0xff] }
  0xfb   :  { %v3439_v10 = vpack.c.b16 %v456_v4, %v455_v7 }
  0xfc   :  { %v349_v24 = vpop.f32.mrf.mxu0 }
  0xfd   :  { %v3399_v49 = vadd.f32 %v2999_v31, %v349_v24  ;;  %v3459_v24 = vpack.c.b16 %v450_v22, %v449_v23 }
  0xff   :  { %v377_v58 = vpack.c.bf16 %v3399_v49, %v3399_v49 }
 0x101   :  { %v457_v0 = vunpack.c.l.b16 %v377_v58  ;;  %v2928_v58 = vld [vmem:[#allocation8 + $0x48] sm:$0xff] }
 0x104   :  { %v351_v25 = vpop.f32.mrf.mxu0 }
 0x105   :  { %v3393_v45 = vadd.f32 %v2999_v31, %v351_v25  ;;  %v3464_v25 = vld [vmem:[%s4184_s1] sm:$0xff] }
 0x107   :  { %v378_v55 = vpack.c.bf16 %v3393_v45, %v3393_v45 }
 0x109   :  { %v458_v61 = vunpack.c.l.b16 %v378_v55  ;;  %v3501_v55 = vld [vmem:[%s4184_s1 + $0x30] sm:$0xff] }
 0x10b   :  { %v3428_v3 = vpack.c.b16 %v458_v61, %v457_v0  ;;  %v2927_v61 = vld [vmem:[#allocation8 + $0x40] sm:$0xff] }
 0x10c   :  { %v354_v26 = vpop.f32.mrf.mxu0 }
 0x10d   :  { %v3389_v41 = vadd.f32 %v2999_v31, %v354_v26  ;;  %v3471_v26 = vld [vmem:[%s4184_s1 + $0x8] sm:$0xff] }
 0x10f   :  { %v379_v51 = vpack.c.bf16 %v3389_v41, %v3389_v41 }
 0x111   :  { %v459_v57 = vunpack.c.l.b16 %v379_v51  ;;  %v2931_v51 = vld [vmem:[#allocation8 + $0x60] sm:$0xff] }
 0x114   :  { %v356_v27 = vpop.f32.mrf.mxu0 }
 0x115   :  { %v3383_v38 = vadd.f32 %v2999_v31, %v356_v27  ;;  %v3477_v27 = vld [vmem:[%s4184_s1 + $0x10] sm:$0xff] }
 0x117   :  { %v380_v48 = vpack.c.bf16 %v3383_v38, %v3383_v38 }
 0x119   :  { %v460_v54 = vunpack.c.l.b16 %v380_v48  ;;  %v2933_v48 = vld [vmem:[#allocation8 + $0x70] sm:$0xff] }
 0x11b   :  { %v3417_v60 = vpack.c.b16 %v460_v54, %v459_v57  ;;  %v2930_v54 = vld [vmem:[#allocation8 + $0x58] sm:$0xff]  ;;  %v2929_v57 = vld [vmem:[#allocation8 + $0x50] sm:$0xff] }
 0x11c   :  { %v359_v28 = vpop.f32.mrf.mxu0 }
 0x11d   :  { %v3377_v35 = vadd.f32 %v2999_v31, %v359_v28  ;;  %v3483_v28 = vld [vmem:[%s4184_s1 + $0x18] sm:$0xff] }
 0x11f   :  { %v381_v44 = vpack.c.bf16 %v3377_v35, %v3377_v35 }
 0x121   :  { %v461_v50 = vunpack.c.l.b16 %v381_v44  ;;  %v2934_v44 = vld [vmem:[#allocation8 + $0x78] sm:$0xff] }
 0x124   :  { %v361_v29 = vpop.f32.mrf.mxu0 }
 0x125   :  { %v3375_v33 = vadd.f32 %v2999_v31, %v361_v29  ;;  %v2910_v29 = vld [vmem:[#allocation7 + $0x38] sm:$0xff] }
 0x126   :  { %622 = vmatpush.bf16.msra.mxu2 %v2910_v29 }
 0x127   :  { %v382_v40 = vpack.c.bf16 %v3375_v33, %v3375_v33 }
 0x129   :  { %v462_v47 = vunpack.c.l.b16 %v382_v40  ;;  %v2905_v40 = vld [vmem:[#allocation7 + $0x10] sm:$0xff] }
 0x12b   :  { %v3406_v53 = vpack.c.b16 %v462_v47, %v461_v50  ;;  %v3495_v47 = vld [vmem:[%s4184_s1 + $0x28] sm:$0xff] }
 0x12c   :  { %v364_v30 = vpop.f32.mrf.mxu0  ;;  %v2932_v50 = vld [vmem:[#allocation8 + $0x68] sm:$0xff] }
 0x12d   :  { %v3373_v32 = vadd.f32 %v2999_v31, %v364_v30  ;;  %v2909_v30 = vld [vmem:[#allocation7 + $0x30] sm:$0xff] }
 0x12e   :  { %623 = vmatpush.bf16.msra.mxu2 %v2909_v30 }
 0x12f   :  { %v383_v37 = vpack.c.bf16 %v3373_v32, %v3373_v32 }
 0x131   :  { %v463_v42 = vunpack.c.l.b16 %v383_v37  ;;  %v3489_v37 = vld [vmem:[%s4184_s1 + $0x20] sm:$0xff] }
 0x134   :  { %v366_v34 = vpop.f32.mrf.mxu0 }
 0x135   :  { %v3379_v36 = vadd.f32 %v2999_v31, %v366_v34  ;;  %v2908_v31 = vld [vmem:[#allocation7 + $0x28] sm:$0xff]  ;;  %v2907_v34 = vld [vmem:[#allocation7 + $0x20] sm:$0xff] }
 0x136   :  { %624 = vmatpush.bf16.msra.mxu2 %v2908_v31 }
 0x137   :  { %v384_v39 = vpack.c.bf16 %v3379_v36, %v3379_v36 }
 0x139   :  { %v464_v43 = vunpack.c.l.b16 %v384_v39  ;;  %v2906_v39 = vld [vmem:[#allocation7 + $0x18] sm:$0xff] }
 0x13a   :  { %625 = vmatpush.bf16.msra.mxu2 %v2907_v34 }
 0x13b   :  { %v3395_v46 = vpack.c.b16 %v464_v43, %v463_v42  ;;  %v2904_v42 = vld [vmem:[#allocation7 + $0x8] sm:$0xff]  ;;  %v2903_v43 = vld [vmem:[#allocation7] sm:$0xff] }
 0x13d   :  { %481 = vmatpush.bf16.msra.mxu1 %v3395_v46 }
 0x13e   :  { %626 = vmatpush.bf16.msra.mxu2 %v2906_v39 }
 0x141   :  { %482 = vmatpush.bf16.msra.mxu1 %v3406_v53 }
 0x142   :  { %627 = vmatpush.bf16.msra.mxu2 %v2905_v40 }
 0x145   :  { %483 = vmatpush.bf16.msra.mxu1 %v3417_v60 }
 0x146   :  { %628 = vmatpush.bf16.msra.mxu2 %v2904_v42  ;;  %v2918_v42 = vld [vmem:[#allocation8 + $0x38] sm:$0xff] }
 0x147   :  { %763 = vmatpush.bf16.msra.mxu3 %v2918_v42  ;;  %v177_v42 = vld [vmem:[%s4186_s3 + $0x28] sm:$0xff] }
 0x149   :  { %484 = vmatpush.bf16.msra.mxu1 %v3428_v3 }
 0x14a   :  { %629 = vmatpush.bf16.msra.mxu2 %v2903_v43  ;;  %v2917_v43 = vld [vmem:[#allocation8 + $0x30] sm:$0xff] }
 0x14b   :  { %764 = vmatpush.bf16.msra.mxu3 %v2917_v43  ;;  %v176_v43 = vld [vmem:[%s4186_s3 + $0x20] sm:$0xff] }
 0x14d   :  { %485 = vmatpush.bf16.msra.mxu1 %v3439_v10 }
 0x14e   :  { %1346 = vmatpush.bf16.msrb.mxu2 %v2934_v44 }
 0x151   :  { %486 = vmatpush.bf16.msra.mxu1 %v3449_v18 }
 0x152   :  { %1347 = vmatpush.bf16.msrb.mxu2 %v2933_v48  ;;  %v2916_v48 = vld [vmem:[#allocation8 + $0x28] sm:$0xff] }
 0x153   :  { %765 = vmatpush.bf16.msra.mxu3 %v2916_v48 }
 0x155   :  { %487 = vmatpush.bf16.msra.mxu1 %v3456_v16 }
 0x156   :  { %1348 = vmatpush.bf16.msrb.mxu2 %v2932_v50  ;;  %v2915_v50 = vld [vmem:[#allocation8 + $0x20] sm:$0xff] }
 0x157   :  { %766 = vmatpush.bf16.msra.mxu3 %v2915_v50 }
 0x159   :  { %488 = vmatpush.bf16.msra.mxu1 %v3459_v24 }
 0x15a   :  { %1349 = vmatpush.bf16.msrb.mxu2 %v2931_v51 }
 0x15c   :  { %489 = vmatmul.bf16.vlgmr.msra.gmra.mxu1 %v3464_v25 }
 0x15e   :  { %1350 = vmatpush.bf16.msrb.mxu2 %v2930_v54 }
 0x162   :  { %1351 = vmatpush.bf16.msrb.mxu2 %v2929_v57 }
 0x166   :  { %1352 = vmatpush.bf16.msrb.mxu2 %v2928_v58 }
 0x16a   :  { %1353 = vmatpush.bf16.msrb.mxu2 %v2927_v61  ;;  %v2914_v61 = vld [vmem:[#allocation8 + $0x18] sm:$0xff] }
 0x16b   :  { %767 = vmatpush.bf16.msra.mxu3 %v2914_v61 }
 0x16c   :  { %494 = vmatmul.bf16.gmra.mxu1 %v3471_v26 }
 0x17c   :  { %499 = vmatmul.bf16.gmra.mxu1 %v3477_v27 }
 0x18c   :  { %504 = vmatmul.bf16.gmra.mxu1 %v3483_v28 }
 0x19c   :  { %509 = vmatmul.bf16.gmra.mxu1 %v3489_v37 }
 0x1ac   :  { %514 = vmatmul.bf16.gmra.mxu1 %v3495_v47 }
 0x1bc   :  { %519 = vmatmul.bf16.gmra.mxu1 %v3501_v55 }
 0x1cc   :  { %524 = vmatmul.bf16.gmra.mxu1 %v3507_v62 }
 0x1d9   :  { %v490_v0 = vpop.f32.mrf.mxu1 }
 0x1da   :  { %v530_v4 = vadd.f32 %v490_v0, %v3444_v13 }
 0x1e1   :  { %v492_v1 = vpop.f32.mrf.mxu1 }
 0x1e2   :  { %v531_v5 = vadd.f32 %v492_v1, %v3437_v9  ;;  %v2913_v1 = vld [vmem:[#allocation8 + $0x10] sm:$0xff] }
 0x1e3   :  { %768 = vmatpush.bf16.msra.mxu3 %v2913_v1 }
 0x1e4   :  { %v546_v7 = vpack.c.bf16 %v531_v5, %v530_v4  ;;  %v186_v4 = vld [vmem:[%s4186_s3 + $0x70] sm:$0xff]  ;;  %v3234_v5 = vmov 0  }
 0x1e5   :  { %2996 = vset.pattern.permute.xlu0 %v3234_v5  ;;  %2998 = vset.pattern.permute.xlu2 %v3234_v5 }
 0x1e6   :  { %630 = vmatmul.bf16.vlgmr.msra.gmra.mxu2 %v546_v7  ;;  %900 = vperm.xlu0 %2996, %v186_v4   ;;  %v2912_v7 = vld [vmem:[#allocation8 + $0x8] sm:$0xff] }
 0x1e7   :  { %2070 = vmatpush.bf16.msra.mxu2 %v3395_v46  ;;  %2997 = vset.pattern.permute.xlu1 %v3234_v5 }
 0x1e8   :  { %769 = vmatpush.bf16.msra.mxu3 %v2912_v7 }
 0x1e9   :  { %v495_v8 = vpop.f32.mrf.mxu1 }
 0x1ea   :  { %v532_v12 = vadd.f32 %v495_v8, %v3432_v6 }
 0x1eb   :  { %2071 = vmatpush.bf16.msra.mxu2 %v3406_v53 }
 0x1ef   :  { %2072 = vmatpush.bf16.msra.mxu2 %v3417_v60 }
 0x1f1   :  { %v497_v11 = vpop.f32.mrf.mxu1 }
 0x1f2   :  { %v533_v14 = vadd.f32 %v497_v11, %v3426_v2 }
 0x1f3   :  { %2073 = vmatpush.bf16.msra.mxu2 %v3428_v3 }
 0x1f4   :  { %v547_v15 = vpack.c.bf16 %v533_v14, %v532_v12 }
 0x1f6   :  { %635 = vmatmul.bf16.gmra.mxu2 %v547_v15  ;;  %v2911_v15 = vld [vmem:[#allocation8] sm:$0xff] }
 0x1f7   :  { %2074 = vmatpush.bf16.msra.mxu2 %v3439_v10  ;;  %770 = vmatpush.bf16.msra.mxu3 %v2911_v15 }
 0x1f9   :  { %v500_v19 = vpop.f32.mrf.mxu1 }
 0x1fa   :  { %v534_v53 = vadd.f32 %v500_v19, %v3421_v63  ;;  %v187_v19 = vld [vmem:[%s4186_s3 + $0x78] sm:$0xff] }
 0x1fb   :  { %2075 = vmatpush.bf16.msra.mxu2 %v3449_v18  ;;  %905 = vperm.xlu0 %2996, %v187_v19  }
 0x1ff   :  { %2076 = vmatpush.bf16.msra.mxu2 %v3456_v16 }
 0x201   :  { %v502_v46 = vpop.f32.mrf.mxu1 }
 0x202   :  { %v535_v60 = vadd.f32 %v502_v46, %v3415_v59  ;;  %v180_v46 = vld [vmem:[%s4186_s3 + $0x40] sm:$0xff] }
 0x203   :  { %2077 = vmatpush.bf16.msra.mxu2 %v3459_v24  ;;  %870 = vperm.xlu0 %2996, %v180_v46  }
 0x204   :  { %v548_v17 = vpack.c.bf16 %v535_v60, %v534_v53  ;;  %v184_v53 = vld [vmem:[%s4186_s3 + $0x60] sm:$0xff]  ;;  %v182_v60 = vld [vmem:[%s4186_s3 + $0x50] sm:$0xff] }
 0x205   :  { %890 = vperm.xlu1 %2997, %v184_v53   ;;  %880 = vperm.xlu2 %2998, %v182_v60  }
 0x206   :  { %640 = vmatmul.bf16.gmra.mxu2 %v548_v17  ;;  %v179_v17 = vld [vmem:[%s4186_s3 + $0x38] sm:$0xff] }
 0x209   :  { %v505_v20 = vpop.f32.mrf.mxu1 }
 0x20a   :  { %v536_v21 = vadd.f32 %v505_v20, %v3410_v56 }
 0x20b   :  { %865 = vperm.xlu0 %2996, %v179_v17  }
 0x211   :  { %v507_v3 = vpop.f32.mrf.mxu1 }
 0x212   :  { %v537_v10 = vadd.f32 %v507_v3, %v3404_v52  ;;  %v3555_v3 = vld [vmem:[%s4190_s7] ss:$0 sm:$0xff] }
 0x214   :  { %v549_v22 = vpack.c.bf16 %v537_v10, %v536_v21  ;;  %v185_v21 = vld [vmem:[%s4186_s3 + $0x68] sm:$0xff]  ;;  %v183_v10 = vld [vmem:[%s4186_s3 + $0x58] sm:$0xff] }
 0x215   :  { %895 = vperm.xlu1 %2997, %v185_v21   ;;  %885 = vperm.xlu2 %2998, %v183_v10  }
 0x216   :  { %645 = vmatmul.bf16.gmra.mxu2 %v549_v22  ;;  %v174_v22 = vld [vmem:[%s4186_s3 + $0x10] sm:$0xff] }
 0x217   :  { %840 = vperm.xlu0 %2996, %v174_v22  }
 0x219   :  { %v510_v18 = vpop.f32.mrf.mxu1 }
 0x21a   :  { %v538_v16 = vadd.f32 %v510_v18, %v3399_v49 }
 0x221   :  { %v512_v23 = vpop.f32.mrf.mxu1 }
 0x222   :  { %v539_v29 = vadd.f32 %v512_v23, %v3393_v45 }
 0x224   :  { %v550_v30 = vpack.c.bf16 %v539_v29, %v538_v16 }
 0x226   :  { %650 = vmatmul.bf16.gmra.mxu2 %v550_v30 }
 0x229   :  { %v515_v31 = vpop.f32.mrf.mxu1 }
 0x22a   :  { %v540_v34 = vadd.f32 %v515_v31, %v3389_v41  ;;  %v181_v31 = vld [vmem:[%s4186_s3 + $0x48] sm:$0xff] }
 0x22b   :  { %875 = vperm.xlu1 %2997, %v181_v31  }
 0x231   :  { %v517_v24 = vpop.f32.mrf.mxu1 }
 0x232   :  { %v541_v39 = vadd.f32 %v517_v24, %v3383_v38  ;;  %v178_v24 = vld [vmem:[%s4186_s3 + $0x30] sm:$0xff] }
 0x233   :  { %860 = vperm.xlu2 %2998, %v178_v24   ;;  %850 = vperm.xlu1 %2997, %v176_v43  }
 0x234   :  { %v551_v40 = vpack.c.bf16 %v541_v39, %v540_v34  ;;  %v173_v34 = vld [vmem:[%s4186_s3 + $0x8] sm:$0xff] }
 0x235   :  { %835 = vperm.xlu0 %2996, %v173_v34  }
 0x236   :  { %655 = vmatmul.bf16.gmra.mxu2 %v551_v40 }
 0x239   :  { %v520_v44 = vpop.f32.mrf.mxu1 }
 0x23a   :  { %v542_v54 = vadd.f32 %v520_v44, %v3377_v35 }
 0x23b   :  { %855 = vperm.xlu2 %2998, %v177_v42  }
 0x241   :  { %v522_v51 = vpop.f32.mrf.mxu1 }
 0x242   :  { %v543_v57 = vadd.f32 %v522_v51, %v3375_v33 }
 0x244   :  { %v552_v58 = vpack.c.bf16 %v543_v57, %v542_v54  ;;  %v175_v57 = vld [vmem:[%s4186_s3 + $0x18] sm:$0xff] }
 0x245   :  { %845 = vperm.xlu1 %2997, %v175_v57  }
 0x246   :  { %660 = vmatmul.bf16.gmra.mxu2 %v552_v58  ;;  %v172_v58 = vld [vmem:[%s4186_s3] sm:$0xff]  ;;  %s2444_s3 = sshll.u32 %s3235_s26, 4  ;;  %s2445_s3 = int_to_ptr.vmem [resolvable:$true] %s2444_s3 }
 0x247   :  { %830 = vperm.xlu2 %2998, %v172_v58  }
 0x249   :  { %v525_v0 = vpop.f32.mrf.mxu1 }
 0x24a   :  { %v544_v11 = vadd.f32 %v525_v0, %v3373_v32 }
 0x251   :  { %v527_v8 = vpop.f32.mrf.mxu1 }
 0x252   :  { %v545_v12 = vadd.f32 %v527_v8, %v3379_v36 }
 0x254   :  { %v553_v14 = vpack.c.bf16 %v545_v12, %v544_v11 }
 0x256   :  { %665 = vmatmul.bf16.gmra.mxu2 %v553_v14 }
 0x269   :  { %v631_v20 = vpop.f32.mrf.mxu2 }
 0x26a   :  { %v632_v18 = vadd.f32 %v3555_v3, %v631_v20 }
 0x26c   :  { %v671_v29 = vmax.f32 %v632_v18, 0.0 }
 0x271   :  { %v633_v23 = vpop.f32.mrf.mxu2 }
 0x272   :  { %v634_v16 = vadd.f32 %v3555_v3, %v633_v23 }
 0x274   :  { %v672_v30 = vmax.f32 %v634_v16, 0.0 }
 0x276   :  { %v687_v39 = vpack.c.bf16 %v672_v30, %v671_v29 }
 0x278   :  { %771 = vmatmul.bf16.vlgmr.msra.gmra.mxu3 %v687_v39 }
 0x279   :  { %v636_v40 = vpop.f32.mrf.mxu2 }
 0x27a   :  { %v637_v44 = vadd.f32 %v3555_v3, %v636_v40 }
 0x27c   :  { %v673_v51 = vmax.f32 %v637_v44, 0.0 }
 0x281   :  { %v638_v48 = vpop.f32.mrf.mxu2 }
 0x282   :  { %v639_v50 = vadd.f32 %v3555_v3, %v638_v48 }
 0x284   :  { %v674_v54 = vmax.f32 %v639_v50, 0.0 }
 0x286   :  { %v688_v61 = vpack.c.bf16 %v674_v54, %v673_v51 }
 0x288   :  { %776 = vmatmul.bf16.gmra.mxu3 %v688_v61 }
 0x289   :  { %v641_v0 = vpop.f32.mrf.mxu2 }
 0x28a   :  { %v642_v1 = vadd.f32 %v3555_v3, %v641_v0 }
 0x28c   :  { %v675_v7 = vmax.f32 %v642_v1, 0.0 }
 0x291   :  { %v643_v4 = vpop.f32.mrf.mxu2 }
 0x292   :  { %v644_v5 = vadd.f32 %v3555_v3, %v643_v4 }
 0x294   :  { %v676_v8 = vmax.f32 %v644_v5, 0.0 }
 0x296   :  { %v689_v11 = vpack.c.bf16 %v676_v8, %v675_v7 }
 0x298   :  { %781 = vmatmul.bf16.gmra.mxu3 %v689_v11 }
 0x299   :  { %v646_v12 = vpop.f32.mrf.mxu2 }
 0x29a   :  { %v647_v14 = vadd.f32 %v3555_v3, %v646_v12 }
 0x29c   :  { %v677_v46 = vmax.f32 %v647_v14, 0.0 }
 0x2a1   :  { %v648_v15 = vpop.f32.mrf.mxu2 }
 0x2a2   :  { %v649_v19 = vadd.f32 %v3555_v3, %v648_v15 }
 0x2a4   :  { %v678_v53 = vmax.f32 %v649_v19, 0.0 }
 0x2a6   :  { %v690_v60 = vpack.c.bf16 %v678_v53, %v677_v46 }
 0x2a8   :  { %786 = vmatmul.bf16.gmra.mxu3 %v690_v60 }
 0x2a9   :  { %v651_v17 = vpop.f32.mrf.mxu2 }
 0x2aa   :  { %v652_v20 = vadd.f32 %v3555_v3, %v651_v17  ;;  %v3609_v17 = vpop.permute.xlu0 %900 }
 0x2ab   :  { %4211 = vst [vmem:[#allocation20_spill] sm:$0xff] %v3609_v17 }
 0x2ac   :  { %v679_v22 = vmax.f32 %v652_v20, 0.0  ;;  %v3611_v20 = vpop.permute.xlu1 %890 }
 0x2b1   :  { %v653_v21 = vpop.f32.mrf.mxu2 }
 0x2b2   :  { %v654_v10 = vadd.f32 %v3555_v3, %v653_v21  ;;  %v3613_v21 = vpop.permute.xlu0 %905 }
 0x2b4   :  { %v680_v18 = vmax.f32 %v654_v10, 0.0 }
 0x2b6   :  { %v691_v23 = vpack.c.bf16 %v680_v18, %v679_v22  ;;  %v3615_v22 = vpop.permute.xlu2 %880  ;;  %v3617_v18 = vpop.permute.xlu1 %895 }
 0x2b7   :  { %4212 = vst [vmem:[#allocation21_spill] sm:$0xff] %v3615_v22 }
 0x2b8   :  { %791 = vmatmul.bf16.gmra.mxu3 %v691_v23  ;;  %4213 = vst [vmem:[#allocation22_spill] sm:$0xff] %v3617_v18 }
 0x2b9   :  { %v656_v16 = vpop.f32.mrf.mxu2 }
 0x2ba   :  { %v657_v29 = vadd.f32 %v3555_v3, %v656_v16  ;;  %v3619_v16 = vpop.permute.xlu0 %870 }
 0x2bc   :  { %v681_v24 = vmax.f32 %v657_v29, 0.0  ;;  %v3624_v29 = vld [vmem:[%s4192_s9] ss:$0 sm:$0xff] }
 0x2c1   :  { %v658_v30 = vpop.f32.mrf.mxu2 }
 0x2c2   :  { %v659_v31 = vadd.f32 %v3555_v3, %v658_v30  ;;  %v3626_v30 = vpop.permute.xlu2 %885 }
 0x2c3   :  { %4214 = vst [vmem:[#allocation23_spill] sm:$0xff] %v3626_v30 }
 0x2c4   :  { %v682_v34 = vmax.f32 %v659_v31, 0.0 }
 0x2c6   :  { %v692_v39 = vpack.c.bf16 %v682_v34, %v681_v24  ;;  %v3630_v34 = vpop.permute.xlu1 %875 }
 0x2c7   :  { %4215 = vst [vmem:[#allocation24_spill] sm:$0xff] %v3630_v34 }
 0x2c8   :  { %796 = vmatmul.bf16.gmra.mxu3 %v692_v39 }
 0x2c9   :  { %v661_v40 = vpop.f32.mrf.mxu2 }
 0x2ca   :  { %v662_v42 = vadd.f32 %v3555_v3, %v661_v40 }
 0x2cc   :  { %v683_v48 = vmax.f32 %v662_v42, 0.0 }
 0x2d1   :  { %v663_v43 = vpop.f32.mrf.mxu2 }
 0x2d2   :  { %v664_v44 = vadd.f32 %v3555_v3, %v663_v43 }
 0x2d4   :  { %v684_v50 = vmax.f32 %v664_v44, 0.0 }
 0x2d6   :  { %v693_v51 = vpack.c.bf16 %v684_v50, %v683_v48  ;;  %v3635_v50 = vpop.permute.xlu0 %865 }
 0x2d7   :  { %4216 = vst [vmem:[#allocation25_spill] sm:$0xff] %v3635_v50 }
 0x2d8   :  { %801 = vmatmul.bf16.gmra.mxu3 %v693_v51 }
 0x2d9   :  { %v666_v54 = vpop.f32.mrf.mxu2 }
 0x2da   :  { %v667_v57 = vadd.f32 %v3555_v3, %v666_v54 }
 0x2dc   :  { %v685_v0 = vmax.f32 %v667_v57, 0.0 }
 0x2e1   :  { %v668_v58 = vpop.f32.mrf.mxu2 }
 0x2e2   :  { %v669_v61 = vadd.f32 %v3555_v3, %v668_v58 }
 0x2e4   :  { %v686_v1 = vmax.f32 %v669_v61, 0.0 }
 0x2e6   :  { %v694_v4 = vpack.c.bf16 %v686_v1, %v685_v0  ;;  %v3640_v0 = vpop.permute.xlu2 %860  ;;  %v3642_v1 = vld [vmem:[#allocation10] ss:$0 sm:$0xff] }
 0x2e8   :  { %806 = vmatmul.bf16.gmra.mxu3 %v694_v4 }
 0x2fb   :  { %v772_v5 = vpop.f32.mrf.mxu3 }
 0x303   :  { %v3603_v7 = vpop.f32.mrf.mxu3 }
 0x30b   :  { %v3605_v8 = vpop.f32.mrf.mxu3 }
 0x313   :  { %v3607_v11 = vpop.f32.mrf.mxu3 }
 0x31b   :  { %v782_v12 = vpop.f32.mrf.mxu3 }
 0x323   :  { %v784_v14 = vpop.f32.mrf.mxu3 }
 0x32b   :  { %v787_v15 = vpop.f32.mrf.mxu3 }
 0x333   :  { %v789_v19 = vpop.f32.mrf.mxu3 }
 0x33b   :  { %v792_v46 = vpop.f32.mrf.mxu3 }
 0x33c   :  { %v793_v61 = vadd.f32 %v3624_v29, %v792_v46 }
 0x343   :  { %v794_v53 = vpop.f32.mrf.mxu3 }
 0x344   :  { %v795_v51 = vadd.f32 %v3624_v29, %v794_v53 }
 0x346   :  { %v821_v53 = vmax.f32 %v795_v51, 0.0 }
 0x34b   :  { %v797_v60 = vpop.f32.mrf.mxu3 }
 0x34c   :  { %v798_v43 = vadd.f32 %v3624_v29, %v797_v60 }
 0x34e   :  { %v822_v4 = vmax.f32 %v798_v43, 0.0  ;;  %v3653_v43 = vpop.permute.xlu1 %850 }
 0x353   :  { %v799_v3 = vpop.f32.mrf.mxu3 }
 0x354   :  { %v800_v39 = vadd.f32 %v3624_v29, %v799_v3 }
 0x356   :  { %v823_v54 = vmax.f32 %v800_v39, 0.0  ;;  %v788_v39 = vadd.f32 %v3624_v29, %v787_v15  ;;  %v917_v15 = vmul.f32 %v3630_v34, %v821_v53 }
 0x35b   :  { %v802_v10 = vpop.f32.mrf.mxu3 }
 0x35c   :  { %v803_v24 = vadd.f32 %v3624_v29, %v802_v10  ;;  %v790_v10 = vadd.f32 %v3624_v29, %v789_v19 }
 0x35e   :  { %v824_v44 = vmax.f32 %v803_v24, 0.0 }
 0x360   :  { %v920_v60 = vmul.f32 %v3611_v20, %v824_v44  ;;  %v918_v44 = vmul.f32 %v3615_v22, %v822_v4  ;;  %v783_v4 = vadd.f32 %v3624_v29, %v782_v12  ;;  %v3668_v22 = vpop.permute.xlu0 %840 }
 0x363   :  { %v804_v23 = vpop.f32.mrf.mxu3 }
 0x364   :  { %v805_v31 = vadd.f32 %v3624_v29, %v804_v23  ;;  %v3647_v23 = vld [vmem:[#allocation11] ss:$0 sm:$0xff] }
 0x366   :  { %v825_v40 = vmax.f32 %v805_v31, 0.0  ;;  %v919_v31 = vmul.f32 %v3626_v30, %v823_v54  ;;  %v3660_v54 = vadd.f32 %v3624_v29, %v772_v5  ;;  %v938_v5 = vmul.f32 %v3642_v1, %v918_v44 }
 0x368   :  { %v921_v57 = vmul.f32 %v3617_v18, %v825_v40  ;;  %v820_v40 = vmax.f32 %v793_v61, 0.0  ;;  %v939_v61 = vmul.f32 %v3642_v1, %v919_v31  ;;  %v812_v53 = vmax.f32 %v3660_v54, 0.0 }
 0x369   :  { %v780_v31 = vadd.f32 %v3624_v29, %v3607_v11 }
 0x36a   :  { %v941_v24 = vmul.f32 %v3642_v1, %v921_v57  ;;  %v785_v57 = vadd.f32 %v3624_v29, %v784_v14 }
 0x36b   :  { %v807_v42 = vpop.f32.mrf.mxu3 }
 0x36c   :  { %v808_v48 = vadd.f32 %v3624_v29, %v807_v42 }
 0x36e   :  { %v826_v58 = vmax.f32 %v808_v48, 0.0  ;;  %v940_v48 = vmul.f32 %v3642_v1, %v920_v60  ;;  %v818_v60 = vmax.f32 %v788_v39, 0.0  ;;  %v3677_v39 = vpop.permute.xlu2 %855 }
 0x370   :  { %v922_v3 = vmul.f32 %v3609_v17, %v826_v58  ;;  %v819_v58 = vmax.f32 %v790_v10, 0.0  ;;  %v914_v54 = vmul.f32 %v3640_v0, %v818_v60 }
 0x372   :  { %v942_v46 = vmul.f32 %v3642_v1, %v922_v3  ;;  %v961_v3 = vadd.f32 %v3647_v23, %v941_v24  ;;  %v817_v24 = vmax.f32 %v785_v57, 0.0  ;;  %v915_v12 = vmul.f32 %v3635_v50, %v819_v58 }
 0x373   :  { %v809_v42 = vpop.f32.mrf.mxu3  ;;  %v958_v57 = vadd.f32 %v3647_v23, %v938_v5 }
 0x374   :  { %v962_v19 = vadd.f32 %v3647_v23, %v942_v46  ;;  %v810_v51 = vadd.f32 %v3624_v29, %v809_v42  ;;  %v916_v46 = vmul.f32 %v3619_v16, %v820_v40  ;;  %v960_v42 = vadd.f32 %v3647_v23, %v940_v48 }
 0x375   :  { %v937_v40 = vmul.f32 %v3642_v1, %v917_v15  ;;  %v977_v44 = vmax.f32 %v961_v3, 0.0  ;;  %v815_v3 = vmax.f32 %v780_v31, 0.0 }
 0x376   :  { %v827_v30 = vmax.f32 %v810_v51, 0.0  ;;  %v978_v14 = vmax.f32 %v962_v19, 0.0  ;;  %v959_v51 = vadd.f32 %v3647_v23, %v939_v61  ;;  %v816_v19 = vmax.f32 %v783_v4, 0.0  ;;  %v3695_v4 = vpop.permute.xlu1 %845 }
 0x377   :  { %v936_v11 = vmul.f32 %v3642_v1, %v916_v46  ;;  %v976_v58 = vmax.f32 %v960_v42, 0.0  ;;  %v775_v61 = vadd.f32 %v3624_v29, %v3603_v7  ;;  %v957_v60 = vadd.f32 %v3647_v23, %v937_v40 }
 0x378   :  { %v923_v10 = vmul.f32 %v3613_v21, %v827_v30  ;;  %v778_v30 = vadd.f32 %v3624_v29, %v3605_v8  ;;  %v3689_v15 = vadd.f32 %v978_v14, %v3373_v32  ;;  %v935_v8 = vmul.f32 %v3642_v1, %v915_v12 }
 0x379   :  { %v975_v46 = vmax.f32 %v959_v51, 0.0  ;;  %v3699_v42 = vadd.f32 %v977_v44, %v3375_v33  ;;  %v912_v32 = vmul.f32 %v3653_v43, %v816_v19  ;;  %v934_v14 = vmul.f32 %v3642_v1, %v914_v54  ;;  %v3715_v44 = vpop.permute.xlu0 %835 }
 0x37a   :  { %v943_v48 = vmul.f32 %v3642_v1, %v923_v10  ;;  %v913_v10 = vmul.f32 %v3677_v39, %v817_v24  ;;  %v956_v7 = vadd.f32 %v3647_v23, %v936_v11  ;;  %v974_v29 = vmax.f32 %v958_v57, 0.0 }
 0x37b   :  { %v1010_v24 = vpack.c.bf16 %v3689_v15, %v3689_v15  ;;  %v3710_v12 = vadd.f32 %v976_v58, %v3377_v35  ;;  %v911_v33 = vmul.f32 %v3695_v4, %v815_v3  ;;  %v955_v51 = vadd.f32 %v3647_v23, %v935_v8 }
 0x37c   :  { %v963_v50 = vadd.f32 %v3647_v23, %v943_v48  ;;  %v814_v48 = vmax.f32 %v778_v30, 0.0  ;;  %v933_v40 = vmul.f32 %v3642_v1, %v913_v10  ;;  %v973_v30 = vmax.f32 %v957_v60, 0.0 }
 0x37d   :  { %v1009_v19 = vpack.c.bf16 %v3699_v42, %v3699_v42  ;;  %v3722_v54 = vadd.f32 %v975_v46, %v3383_v38  ;;  %v932_v11 = vmul.f32 %v3642_v1, %v912_v32  ;;  %v954_v57 = vadd.f32 %v3647_v23, %v934_v14 }
 0x37e   :  { %v979_v5 = vmax.f32 %v963_v50, 0.0  ;;  %v813_v50 = vmax.f32 %v775_v61, 0.0  ;;  %v910_v35 = vmul.f32 %v3668_v22, %v814_v48  ;;  %v972_v58 = vmax.f32 %v956_v7, 0.0  ;;  %v3727_v61 = vpop.permute.xlu2 %830 }
 0x37f   :  { %v1042_v3 = vunpack.c.l.b16 %v1010_v24  ;;  %v1008_v8 = vpack.c.bf16 %v3710_v12, %v3710_v12  ;;  %v3732_v60 = vadd.f32 %v974_v29, %v3389_v41  ;;  %v931_v46 = vmul.f32 %v3642_v1, %v911_v33 }
 0x380   :  { %v3705_v31 = vadd.f32 %v979_v5, %v3379_v36  ;;  %v909_v38 = vmul.f32 %v3715_v44, %v813_v50  ;;  %v953_v5 = vadd.f32 %v3647_v23, %v933_v40  ;;  %v971_v48 = vmax.f32 %v955_v51, 0.0 }
 0x381   :  { %v1041_v14 = vunpack.c.l.b16 %v1009_v19  ;;  %v1007_v7 = vpack.c.bf16 %v3722_v54, %v3722_v54  ;;  %v3742_v24 = vadd.f32 %v973_v30, %v3393_v45  ;;  %v930_v41 = vmul.f32 %v3642_v1, %v910_v35 }
 0x382   :  { %v1011_v36 = vpack.c.bf16 %v3705_v31, %v3705_v31  ;;  %v952_v29 = vadd.f32 %v3647_v23, %v932_v11  ;;  %v970_v50 = vmax.f32 %v954_v57, 0.0  ;;  %v1040_v33 = vunpack.c.l.b16 %v1008_v8 }
 0x383   :  { %v1006_v40 = vpack.c.bf16 %v3732_v60, %v3732_v60  ;;  %v3751_v51 = vadd.f32 %v972_v58, %v3399_v49  ;;  %v929_v19 = vmul.f32 %v3642_v1, %v909_v38  ;;  %v951_v45 = vadd.f32 %v3647_v23, %v931_v46 }
 0x384   :  { %v1043_v10 = vunpack.c.l.b16 %v1011_v36  ;;  %v908_v36 = vmul.f32 %v3727_v61, %v812_v53  ;;  %v969_v30 = vmax.f32 %v953_v5, 0.0  ;;  %v3755_v53 = vpack.c.b16 %v1041_v14, %v1040_v33 }
 0x385   :  { %v1039_v35 = vunpack.c.l.b16 %v1007_v7  ;;  %v1005_v11 = vpack.c.bf16 %v3742_v24, %v3742_v24  ;;  %v3760_v57 = vadd.f32 %v971_v48, %v3404_v52  ;;  %v968_v49 = vmax.f32 %v952_v29, 0.0 }
 0x386   :  { %v3737_v32 = vpack.c.b16 %v1043_v10, %v1042_v3  ;;  %v928_v3 = vmul.f32 %v3642_v1, %v908_v36  ;;  %v950_v10 = vadd.f32 %v3647_v23, %v930_v41  ;;  %v1038_v58 = vunpack.c.l.b16 %v1006_v40 }
 0x387   :  { %v1004_v8 = vpack.c.bf16 %v3751_v51, %v3751_v51  ;;  %v3768_v38 = vadd.f32 %v970_v50, %v3410_v56  ;;  %v949_v46 = vadd.f32 %v3647_v23, %v929_v19  ;;  %v967_v5 = vmax.f32 %v951_v45, 0.0 }
 0x388   :  { %1060 = vmatpush.bf16.msrb.mxu0 %v3737_v32  ;;  %v3771_v14 = vpack.c.b16 %v1039_v35, %v1038_v58  ;;  %v1037_v52 = vunpack.c.l.b16 %v1005_v11  ;;  %v1003_v1 = vpack.c.bf16 %v3760_v57, %v3760_v57  ;;  %v3776_v48 = vadd.f32 %v969_v30, %v3415_v59 }
 0x389   :  { %v948_v7 = vadd.f32 %v3647_v23, %v928_v3  ;;  %v966_v36 = vmax.f32 %v950_v10, 0.0  ;;  %v1036_v41 = vunpack.c.l.b16 %v1004_v8  ;;  %v1002_v56 = vpack.c.bf16 %v3768_v38, %v3768_v38 }
 0x38a   :  { %v3783_v29 = vadd.f32 %v968_v49, %v3421_v63  ;;  %v965_v50 = vmax.f32 %v949_v46, 0.0  ;;  %v3786_v33 = vadd.f32 %v967_v5, %v3426_v2  ;;  %v1035_v59 = vunpack.c.l.b16 %v1003_v1 }
 0x38b   :  { %v3788_v40 = vpack.c.b16 %v1037_v52, %v1036_v41  ;;  %v1001_v23 = vpack.c.bf16 %v3776_v48, %v3776_v48  ;;  %v964_v19 = vmax.f32 %v948_v7, 0.0  ;;  %v1034_v45 = vunpack.c.l.b16 %v1002_v56  ;;  %v2925_v41 = vld [vmem:[#allocation7 + $0x70] sm:$0xff]  ;;  %v2924_v56 = vld [vmem:[#allocation7 + $0x68] sm:$0xff] }
 0x38c   :  { %1061 = vmatpush.bf16.msrb.mxu0 %v3755_v53  ;;  %v1000_v30 = vpack.c.bf16 %v3783_v29, %v3783_v29  ;;  %v3796_v63 = vadd.f32 %v966_v36, %v3432_v6  ;;  %v3799_v35 = vadd.f32 %v965_v50, %v3437_v9  ;;  %v999_v3 = vpack.c.bf16 %v3786_v33, %v3786_v33  ;;  %v2926_v36 = vld [vmem:[#allocation7 + $0x78] sm:$0xff]  ;;  %v2923_v50 = vld [vmem:[#allocation7 + $0x60] sm:$0xff] }
 0x38d   :  { %v3801_v2 = vpack.c.b16 %v1035_v59, %v1034_v45  ;;  %v1033_v11 = vunpack.c.l.b16 %v1001_v23  ;;  %v3806_v10 = vadd.f32 %v964_v19, %v3444_v13  ;;  %1203 = vmatpush.bf16.msrb.mxu1 %v2926_v36  ;;  %v2922_v59 = vld [vmem:[#allocation7 + $0x58] sm:$0xff] }
 0x38e   :  { %v1032_v49 = vunpack.c.l.b16 %v1000_v30  ;;  %v998_v58 = vpack.c.bf16 %v3796_v63, %v3796_v63  ;;  %v1031_v8 = vunpack.c.l.b16 %v999_v3  ;;  %v997_v9 = vpack.c.bf16 %v3799_v35, %v3799_v35 }
 0x38f   :  { %4217 = vst [vmem:[#allocation26_spill] sm:$0xff] %v3801_v2  ;;  %v996_v5 = vpack.c.bf16 %v3806_v10, %v3806_v10 }
 0x390   :  { %1062 = vmatpush.bf16.msrb.mxu0 %v3771_v14  ;;  %v3811_v6 = vpack.c.b16 %v1033_v11, %v1032_v49  ;;  %v1030_v46 = vunpack.c.l.b16 %v998_v58  ;;  %v1029_v52 = vunpack.c.l.b16 %v997_v9 }
 0x391   :  { %v1028_v1 = vunpack.c.l.b16 %v996_v5  ;;  %1204 = vmatpush.bf16.msrb.mxu1 %v2925_v41 }
 0x392   :  { %4218 = vst [vmem:[#allocation27_spill] sm:$0xff] %v3811_v6  ;;  %v3818_v13 = vpack.c.b16 %v1031_v8, %v1030_v46 }
 0x393   :  { %v3821_v7 = vpack.c.b16 %v1029_v52, %v1028_v1 }
 0x394   :  { %1063 = vmatpush.bf16.msrb.mxu0 %v3788_v40  ;;  %4219 = vst [vmem:[#allocation28_spill] sm:$0xff] %v3818_v13 }
 0x395   :  { %4220 = vst [vmem:[#allocation29_spill] sm:$0xff] %v3821_v7  ;;  %1205 = vmatpush.bf16.msrb.mxu1 %v2924_v56 }
 0x398   :  { %1064 = vmatpush.bf16.msrb.mxu0 %v3801_v2 }
 0x399   :  { %1206 = vmatpush.bf16.msrb.mxu1 %v2923_v50 }
 0x39c   :  { %1065 = vmatpush.bf16.msrb.mxu0 %v3811_v6 }
 0x39d   :  { %1207 = vmatpush.bf16.msrb.mxu1 %v2922_v59 }
 0x3a0   :  { %1066 = vmatpush.bf16.msrb.mxu0 %v3818_v13  ;;  %v3859_v13 = vld [vmem:[#allocation10 + $0x1] ss:$0 sm:$0xff] }
 0x3a4   :  { %1067 = vmatpush.bf16.msrb.mxu0 %v3821_v7 }
 0x3a7   :  { %1068 = vmatmul.bf16.vlgmr.msrb.gmra.mxu0 %v3464_v25  ;;  %v2921_v25 = vld [vmem:[#allocation7 + $0x50] sm:$0xff] }
 0x3a8   :  { %1208 = vmatpush.bf16.msrb.mxu1 %v2921_v25 }
 0x3b7   :  { %1073 = vmatmul.bf16.gmra.mxu0 %v3471_v26  ;;  %v2920_v26 = vld [vmem:[#allocation7 + $0x48] sm:$0xff] }
 0x3b8   :  { %1209 = vmatpush.bf16.msrb.mxu1 %v2920_v26 }
 0x3c7   :  { %1078 = vmatmul.bf16.gmra.mxu0 %v3477_v27  ;;  %v2919_v27 = vld [vmem:[#allocation7 + $0x40] sm:$0xff] }
 0x3c8   :  { %1210 = vmatpush.bf16.msrb.mxu1 %v2919_v27 }
 0x3d7   :  { %1083 = vmatmul.bf16.gmra.mxu0 %v3483_v28 }
 0x3e7   :  { %1088 = vmatmul.bf16.gmra.mxu0 %v3489_v37 }
 0x3f7   :  { %1093 = vmatmul.bf16.gmra.mxu0 %v3495_v47 }
 0x407   :  { %1098 = vmatmul.bf16.gmra.mxu0 %v3501_v55 }
 0x417   :  { %1103 = vmatmul.bf16.gmra.mxu0 %v3507_v62 }
 0x424   :  { %v1069_v28 = vpop.f32.mrf.mxu0 }
 0x425   :  { %v1109_v47 = vadd.f32 %v1069_v28, %v3806_v10 }
 0x42c   :  { %v1071_v37 = vpop.f32.mrf.mxu0 }
 0x42d   :  { %v1110_v23 = vadd.f32 %v1071_v37, %v3799_v35 }
 0x42f   :  { %v1125_v19 = vpack.c.bf16 %v1110_v23, %v1109_v47 }
 0x431   :  { %1211 = vmatmul.bf16.vlgmr.msrb.gmra.mxu1 %v1125_v19 }
 0x434   :  { %v1074_v45 = vpop.f32.mrf.mxu0 }
 0x435   :  { %v1111_v11 = vadd.f32 %v1074_v45, %v3796_v63 }
 0x43c   :  { %v1076_v30 = vpop.f32.mrf.mxu0 }
 0x43d   :  { %v1112_v55 = vadd.f32 %v1076_v30, %v3786_v33 }
 0x43f   :  { %v1126_v3 = vpack.c.bf16 %v1112_v55, %v1111_v11 }
 0x441   :  { %1216 = vmatmul.bf16.gmra.mxu1 %v1126_v3 }
 0x444   :  { %v1079_v49 = vpop.f32.mrf.mxu0 }
 0x445   :  { %v1113_v62 = vadd.f32 %v1079_v49, %v3783_v29 }
 0x44c   :  { %v1081_v58 = vpop.f32.mrf.mxu0 }
 0x44d   :  { %v1114_v8 = vadd.f32 %v1081_v58, %v3776_v48 }
 0x44f   :  { %v1127_v9 = vpack.c.bf16 %v1114_v8, %v1113_v62 }
 0x451   :  { %1221 = vmatmul.bf16.gmra.mxu1 %v1127_v9  ;;  %v3004_v9 = vld [vmem:[%s4190_s7 + $0x1] ss:$0 sm:$0xff] }
 0x454   :  { %v1084_v46 = vpop.f32.mrf.mxu0 }
 0x455   :  { %v1115_v52 = vadd.f32 %v1084_v46, %v3768_v38 }
 0x45c   :  { %v1086_v5 = vpop.f32.mrf.mxu0 }
 0x45d   :  { %v1116_v1 = vadd.f32 %v1086_v5, %v3760_v57 }
 0x45f   :  { %v1128_v36 = vpack.c.bf16 %v1116_v1, %v1115_v52 }
 0x461   :  { %1226 = vmatmul.bf16.gmra.mxu1 %v1128_v36 }
 0x464   :  { %v1089_v41 = vpop.f32.mrf.mxu0 }
 0x465   :  { %v1117_v50 = vadd.f32 %v1089_v41, %v3751_v51 }
 0x46c   :  { %v1091_v56 = vpop.f32.mrf.mxu0 }
 0x46d   :  { %v1118_v59 = vadd.f32 %v1091_v56, %v3742_v24 }
 0x46f   :  { %v1129_v25 = vpack.c.bf16 %v1118_v59, %v1117_v50 }
 0x471   :  { %1231 = vmatmul.bf16.gmra.mxu1 %v1129_v25 }
 0x474   :  { %v1094_v26 = vpop.f32.mrf.mxu0 }
 0x475   :  { %v1119_v28 = vadd.f32 %v1094_v26, %v3732_v60 }
 0x47c   :  { %v1096_v27 = vpop.f32.mrf.mxu0 }
 0x47d   :  { %v1120_v37 = vadd.f32 %v1096_v27, %v3722_v54 }
 0x47f   :  { %v1130_v47 = vpack.c.bf16 %v1120_v37, %v1119_v28 }
 0x481   :  { %1236 = vmatmul.bf16.gmra.mxu1 %v1130_v47 }
 0x484   :  { %v1099_v23 = vpop.f32.mrf.mxu0 }
 0x485   :  { %v1121_v45 = vadd.f32 %v1099_v23, %v3710_v12 }
 0x48c   :  { %v1101_v19 = vpop.f32.mrf.mxu0 }
 0x48d   :  { %v1122_v30 = vadd.f32 %v1101_v19, %v3699_v42 }
 0x48f   :  { %v1131_v11 = vpack.c.bf16 %v1122_v30, %v1121_v45 }
 0x491   :  { %1241 = vmatmul.bf16.gmra.mxu1 %v1131_v11 }
 0x494   :  { %v1104_v55 = vpop.f32.mrf.mxu0 }
 0x495   :  { %v1123_v49 = vadd.f32 %v1104_v55, %v3689_v15 }
 0x49c   :  { %v1106_v3 = vpop.f32.mrf.mxu0 }
 0x49d   :  { %v1124_v58 = vadd.f32 %v1106_v3, %v3705_v31 }
 0x49f   :  { %v1132_v62 = vpack.c.bf16 %v1124_v58, %v1123_v49 }
 0x4a1   :  { %1246 = vmatmul.bf16.gmra.mxu1 %v1132_v62 }
 0x4ae   :  { %v1212_v8 = vpop.f32.mrf.mxu1 }
 0x4af   :  { %v1213_v46 = vadd.f32 %v3004_v9, %v1212_v8 }
 0x4b1   :  { %v1252_v1 = vmax.f32 %v1213_v46, 0.0 }
 0x4b6   :  { %v1214_v5 = vpop.f32.mrf.mxu1 }
 0x4b7   :  { %v1215_v52 = vadd.f32 %v3004_v9, %v1214_v5 }
 0x4b9   :  { %v1253_v36 = vmax.f32 %v1215_v52, 0.0 }
 0x4bb   :  { %v1268_v41 = vpack.c.bf16 %v1253_v36, %v1252_v1 }
 0x4bd   :  { %1354 = vmatmul.bf16.vlgmr.msrb.gmra.mxu2 %v1268_v41 }
 0x4be   :  { %v1217_v56 = vpop.f32.mrf.mxu1 }
 0x4bf   :  { %v1218_v50 = vadd.f32 %v3004_v9, %v1217_v56 }
 0x4c1   :  { %v1254_v26 = vmax.f32 %v1218_v50, 0.0 }
 0x4c6   :  { %v1219_v59 = vpop.f32.mrf.mxu1 }
 0x4c7   :  { %v1220_v25 = vadd.f32 %v3004_v9, %v1219_v59 }
 0x4c9   :  { %v1255_v27 = vmax.f32 %v1220_v25, 0.0 }
 0x4cb   :  { %v1269_v28 = vpack.c.bf16 %v1255_v27, %v1254_v26 }
 0x4cd   :  { %1359 = vmatmul.bf16.gmra.mxu2 %v1269_v28 }
 0x4ce   :  { %v1222_v37 = vpop.f32.mrf.mxu1 }
 0x4cf   :  { %v1223_v47 = vadd.f32 %v3004_v9, %v1222_v37 }
 0x4d1   :  { %v1256_v45 = vmax.f32 %v1223_v47, 0.0 }
 0x4d6   :  { %v1224_v23 = vpop.f32.mrf.mxu1 }
 0x4d7   :  { %v1225_v19 = vadd.f32 %v3004_v9, %v1224_v23 }
 0x4d9   :  { %v1257_v30 = vmax.f32 %v1225_v19, 0.0 }
 0x4db   :  { %v1270_v11 = vpack.c.bf16 %v1257_v30, %v1256_v45 }
 0x4dd   :  { %1364 = vmatmul.bf16.gmra.mxu2 %v1270_v11 }
 0x4de   :  { %v1227_v55 = vpop.f32.mrf.mxu1 }
 0x4df   :  { %v1228_v3 = vadd.f32 %v3004_v9, %v1227_v55 }
 0x4e1   :  { %v1258_v62 = vmax.f32 %v1228_v3, 0.0 }
 0x4e6   :  { %v1229_v49 = vpop.f32.mrf.mxu1 }
 0x4e7   :  { %v1230_v58 = vadd.f32 %v3004_v9, %v1229_v49 }
 0x4e9   :  { %v1259_v8 = vmax.f32 %v1230_v58, 0.0 }
 0x4eb   :  { %v1271_v46 = vpack.c.bf16 %v1259_v8, %v1258_v62 }
 0x4ed   :  { %1369 = vmatmul.bf16.gmra.mxu2 %v1271_v46 }
 0x4ee   :  { %v1232_v5 = vpop.f32.mrf.mxu1 }
 0x4ef   :  { %v1233_v52 = vadd.f32 %v3004_v9, %v1232_v5 }
 0x4f1   :  { %v1260_v41 = vmax.f32 %v1233_v52, 0.0 }
 0x4f6   :  { %v1234_v1 = vpop.f32.mrf.mxu1 }
 0x4f7   :  { %v1235_v36 = vadd.f32 %v3004_v9, %v1234_v1 }
 0x4f9   :  { %v1261_v56 = vmax.f32 %v1235_v36, 0.0 }
 0x4fb   :  { %v1272_v50 = vpack.c.bf16 %v1261_v56, %v1260_v41 }
 0x4fd   :  { %1374 = vmatmul.bf16.gmra.mxu2 %v1272_v50 }
 0x4fe   :  { %v1237_v59 = vpop.f32.mrf.mxu1 }
 0x4ff   :  { %v1238_v25 = vadd.f32 %v3004_v9, %v1237_v59 }
 0x501   :  { %v1262_v28 = vmax.f32 %v1238_v25, 0.0 }
 0x506   :  { %v1239_v26 = vpop.f32.mrf.mxu1 }
 0x507   :  { %v1240_v27 = vadd.f32 %v3004_v9, %v1239_v26 }
 0x509   :  { %v1263_v37 = vmax.f32 %v1240_v27, 0.0 }
 0x50b   :  { %v1273_v47 = vpack.c.bf16 %v1263_v37, %v1262_v28 }
 0x50d   :  { %1379 = vmatmul.bf16.gmra.mxu2 %v1273_v47 }
 0x50e   :  { %v1242_v23 = vpop.f32.mrf.mxu1 }
 0x50f   :  { %v1243_v19 = vadd.f32 %v3004_v9, %v1242_v23 }
 0x511   :  { %v1264_v11 = vmax.f32 %v1243_v19, 0.0  ;;  %v3005_v19 = vld [vmem:[%s4192_s9 + $0x1] ss:$0 sm:$0xff] }
 0x516   :  { %v1244_v45 = vpop.f32.mrf.mxu1 }
 0x517   :  { %v1245_v30 = vadd.f32 %v3004_v9, %v1244_v45 }
 0x519   :  { %v1265_v55 = vmax.f32 %v1245_v30, 0.0 }
 0x51b   :  { %v1274_v3 = vpack.c.bf16 %v1265_v55, %v1264_v11 }
 0x51d   :  { %1384 = vmatmul.bf16.gmra.mxu2 %v1274_v3 }
 0x51e   :  { %v1247_v49 = vpop.f32.mrf.mxu1 }
 0x51f   :  { %v1248_v58 = vadd.f32 %v3004_v9, %v1247_v49 }
 0x521   :  { %v1266_v46 = vmax.f32 %v1248_v58, 0.0 }
 0x526   :  { %v1249_v62 = vpop.f32.mrf.mxu1 }
 0x527   :  { %v1250_v8 = vadd.f32 %v3004_v9, %v1249_v62 }
 0x529   :  { %v1267_v5 = vmax.f32 %v1250_v8, 0.0 }
 0x52b   :  { %v1275_v52 = vpack.c.bf16 %v1267_v5, %v1266_v46 }
 0x52d   :  { %1389 = vmatmul.bf16.gmra.mxu2 %v1275_v52 }
 0x540   :  { %v1355_v1 = vpop.f32.mrf.mxu2 }
 0x548   :  { %v3851_v36 = vpop.f32.mrf.mxu2 }
 0x550   :  { %v3853_v41 = vpop.f32.mrf.mxu2 }
 0x558   :  { %v1362_v56 = vpop.f32.mrf.mxu2 }
 0x560   :  { %v1365_v50 = vpop.f32.mrf.mxu2 }
 0x568   :  { %v1367_v59 = vpop.f32.mrf.mxu2 }
 0x570   :  { %v1370_v25 = vpop.f32.mrf.mxu2 }
 0x578   :  { %v1372_v26 = vpop.f32.mrf.mxu2 }
 0x580   :  { %v1375_v27 = vpop.f32.mrf.mxu2 }
 0x581   :  { %v1376_v7 = vadd.f32 %v3005_v19, %v1375_v27 }
 0x588   :  { %v1377_v28 = vpop.f32.mrf.mxu2 }
 0x589   :  { %v1378_v8 = vadd.f32 %v3005_v19, %v1377_v28 }
 0x590   :  { %v1380_v37 = vpop.f32.mrf.mxu2 }
 0x591   :  { %v1381_v49 = vadd.f32 %v3005_v19, %v1380_v37  ;;  %v4221_v37 = vld [vmem:[#allocation23_spill] sm:$0xff] }
 0x593   :  { %v1405_v6 = vmax.f32 %v1381_v49, 0.0 }
 0x598   :  { %v1382_v47 = vpop.f32.mrf.mxu2 }
 0x599   :  { %v1383_v11 = vadd.f32 %v3005_v19, %v1382_v47  ;;  %v3863_v47 = vld [vmem:[#allocation11 + $0x1] ss:$0 sm:$0xff] }
 0x59b   :  { %v1406_v46 = vmax.f32 %v1383_v11, 0.0 }
 0x5a0   :  { %v1385_v23 = vpop.f32.mrf.mxu2 }
 0x5a1   :  { %v1386_v30 = vadd.f32 %v3005_v19, %v1385_v23  ;;  %v1373_v23 = vadd.f32 %v3005_v19, %v1372_v26  ;;  %v3871_v26 = vadd.f32 %v3005_v19, %v1355_v1 }
 0x5a3   :  { %v1407_v58 = vmax.f32 %v1386_v30, 0.0  ;;  %v1422_v30 = vmul.f32 %v1406_v46, %v4221_v37 }
 0x5a5   :  { %v1423_v2 = vmul.f32 %v1407_v58, %v3611_v20 }
 0x5a7   :  { %v1444_v49 = vmul.f32 %v3859_v13, %v1423_v2 }
 0x5a8   :  { %v1387_v9 = vpop.f32.mrf.mxu2 }
 0x5a9   :  { %v1388_v45 = vadd.f32 %v3005_v19, %v1387_v9 }
 0x5ab   :  { %v1408_v55 = vmax.f32 %v1388_v45, 0.0  ;;  %v1404_v45 = vmax.f32 %v1378_v8, 0.0  ;;  %v1402_v8 = vmax.f32 %v1373_v23, 0.0  ;;  %v1363_v23 = vadd.f32 %v3005_v19, %v1362_v56 }
 0x5ad   :  { %v1424_v5 = vmul.f32 %v1408_v55, %v3617_v18  ;;  %v1371_v55 = vadd.f32 %v3005_v19, %v1370_v25  ;;  %v1420_v46 = vmul.f32 %v1404_v45, %v3630_v34  ;;  %v4223_v34 = vld [vmem:[#allocation25_spill] sm:$0xff] }
 0x5af   :  { %v1445_v28 = vmul.f32 %v3859_v13, %v1424_v5  ;;  %v1443_v5 = vmul.f32 %v3859_v13, %v1422_v30  ;;  %v1401_v37 = vmax.f32 %v1371_v55, 0.0  ;;  %v1418_v30 = vmul.f32 %v1402_v8, %v4223_v34 }
 0x5b0   :  { %v1390_v3 = vpop.f32.mrf.mxu2 }
 0x5b1   :  { %v1391_v62 = vadd.f32 %v3005_v19, %v1390_v3  ;;  %v1403_v3 = vmax.f32 %v1376_v7, 0.0  ;;  %v1366_v7 = vadd.f32 %v3005_v19, %v1365_v50  ;;  %v1464_v50 = vadd.f32 %v3863_v47, %v1443_v5 }
 0x5b2   :  { %v1398_v5 = vmax.f32 %v1363_v23, 0.0 }
 0x5b3   :  { %v1409_v52 = vmax.f32 %v1391_v62, 0.0  ;;  %v4222_v62 = vld [vmem:[#allocation21_spill] sm:$0xff] }
 0x5b4   :  { %v1421_v18 = vmul.f32 %v1405_v6, %v4222_v62  ;;  %v1419_v6 = vmul.f32 %v1403_v3, %v3619_v16 }
 0x5b5   :  { %v1425_v9 = vmul.f32 %v1409_v52, %v3609_v17  ;;  %v1368_v17 = vadd.f32 %v3005_v19, %v1367_v59  ;;  %v1395_v59 = vmax.f32 %v3871_v26, 0.0 }
 0x5b6   :  { %v1442_v2 = vmul.f32 %v3859_v13, %v1421_v18  ;;  %v1361_v18 = vadd.f32 %v3005_v19, %v3853_v41  ;;  %v1439_v41 = vmul.f32 %v3859_v13, %v1418_v30 }
 0x5b7   :  { %v1446_v11 = vmul.f32 %v3859_v13, %v1425_v9  ;;  %v1466_v9 = vadd.f32 %v3863_v47, %v1445_v28  ;;  %v1400_v45 = vmax.f32 %v1368_v17, 0.0  ;;  %v1441_v28 = vmul.f32 %v3859_v13, %v1420_v46 }
 0x5b8   :  { %v1392_v27 = vpop.f32.mrf.mxu2  ;;  %v1463_v26 = vadd.f32 %v3863_v47, %v1442_v2  ;;  %v1358_v46 = vadd.f32 %v3005_v19, %v3851_v36  ;;  %v1397_v2 = vmax.f32 %v1361_v18, 0.0 }
 0x5b9   :  { %v1467_v58 = vadd.f32 %v3863_v47, %v1446_v11  ;;  %v1393_v52 = vadd.f32 %v3005_v19, %v1392_v27  ;;  %v1465_v11 = vadd.f32 %v3863_v47, %v1444_v49  ;;  %v1482_v55 = vmax.f32 %v1466_v9, 0.0 }
 0x5ba   :  { %v1417_v49 = vmul.f32 %v1401_v37, %v3640_v0  ;;  %v1416_v9 = vmul.f32 %v1400_v45, %v3677_v39  ;;  %v1480_v37 = vmax.f32 %v1464_v50, 0.0  ;;  %v1479_v36 = vmax.f32 %v1463_v26, 0.0 }
 0x5bb   :  { %v1410_v25 = vmax.f32 %v1393_v52, 0.0  ;;  %v1483_v27 = vmax.f32 %v1467_v58, 0.0  ;;  %v1399_v52 = vmax.f32 %v1366_v7, 0.0  ;;  %v1440_v58 = vmul.f32 %v3859_v13, %v1419_v6 }
 0x5bc   :  { %v1481_v56 = vmax.f32 %v1465_v11, 0.0  ;;  %v3898_v6 = vadd.f32 %v1482_v55, %v3699_v42  ;;  %v1396_v45 = vmax.f32 %v1358_v46, 0.0  ;;  %v1414_v42 = vmul.f32 %v1398_v5, %v3695_v4 }
 0x5bd   :  { %v1426_v1 = vmul.f32 %v1410_v25, %v3613_v21  ;;  %v3891_v8 = vadd.f32 %v1483_v27, %v3689_v15  ;;  %v1462_v25 = vadd.f32 %v3863_v47, %v1441_v28  ;;  %v1415_v11 = vmul.f32 %v1399_v52, %v3653_v43 }
 0x5be   :  { %v1438_v15 = vmul.f32 %v3859_v13, %v1417_v49  ;;  %v1461_v27 = vadd.f32 %v3863_v47, %v1440_v58  ;;  %v3909_v23 = vadd.f32 %v1481_v56, %v3710_v12  ;;  %v1437_v30 = vmul.f32 %v3859_v13, %v1416_v9 }
 0x5bf   :  { %v1447_v3 = vmul.f32 %v3859_v13, %v1426_v1  ;;  %v1515_v1 = vpack.c.bf16 %v3891_v8, %v3891_v8  ;;  %v1460_v28 = vadd.f32 %v3863_v47, %v1439_v41  ;;  %v1478_v50 = vmax.f32 %v1462_v25, 0.0 }
 0x5c0   :  { %v1413_v12 = vmul.f32 %v1397_v2, %v3668_v22  ;;  %v1436_v18 = vmul.f32 %v3859_v13, %v1415_v11  ;;  %v1459_v52 = vadd.f32 %v3863_v47, %v1438_v15  ;;  %v1477_v49 = vmax.f32 %v1461_v27, 0.0 }
 0x5c1   :  { %v1468_v17 = vadd.f32 %v3863_v47, %v1447_v3  ;;  %v3919_v3 = vadd.f32 %v1480_v37, %v3722_v54  ;;  %v1547_v58 = vunpack.c.l.b16 %v1515_v1  ;;  %v1513_v56 = vpack.c.bf16 %v3909_v23, %v3909_v23 }
 0x5c2   :  { %v1412_v46 = vmul.f32 %v1396_v45, %v3715_v44  ;;  %v1435_v54 = vmul.f32 %v3859_v13, %v1414_v42  ;;  %v1458_v5 = vadd.f32 %v3863_v47, %v1437_v30  ;;  %v1476_v9 = vmax.f32 %v1460_v28, 0.0 }
 0x5c3   :  { %v1484_v7 = vmax.f32 %v1468_v17, 0.0  ;;  %v3927_v17 = vadd.f32 %v1479_v36, %v3732_v60  ;;  %v1512_v37 = vpack.c.bf16 %v3919_v3, %v3919_v3  ;;  %v1411_v2 = vmul.f32 %v1395_v59, %v3727_v61 }
 0x5c4   :  { %v1434_v60 = vmul.f32 %v3859_v13, %v1413_v12  ;;  %v1457_v11 = vadd.f32 %v3863_v47, %v1436_v18  ;;  %v1475_v15 = vmax.f32 %v1459_v52, 0.0  ;;  %v1545_v27 = vunpack.c.l.b16 %v1513_v56 }
 0x5c5   :  { %v3904_v19 = vadd.f32 %v1484_v7, %v3705_v31  ;;  %v1514_v31 = vpack.c.bf16 %v3898_v6, %v3898_v6  ;;  %v3935_v7 = vadd.f32 %v1478_v50, %v3742_v24  ;;  %v1511_v36 = vpack.c.bf16 %v3927_v17, %v3927_v17 }
 0x5c6   :  { %v3943_v1 = vadd.f32 %v1477_v49, %v3751_v51  ;;  %v1433_v45 = vmul.f32 %v3859_v13, %v1412_v46  ;;  %v1456_v24 = vadd.f32 %v3863_v47, %v1435_v54  ;;  %v1474_v42 = vmax.f32 %v1458_v5, 0.0 }
 0x5c7   :  { %v1516_v55 = vpack.c.bf16 %v3904_v19, %v3904_v19  ;;  %v1546_v25 = vunpack.c.l.b16 %v1514_v31  ;;  %v1544_v30 = vunpack.c.l.b16 %v1512_v37  ;;  %v1510_v28 = vpack.c.bf16 %v3935_v7, %v3935_v7 }
 0x5c8   :  { %v3950_v50 = vadd.f32 %v1476_v9, %v3760_v57  ;;  %v1455_v31 = vadd.f32 %v3863_v47, %v1434_v60  ;;  %v1473_v12 = vmax.f32 %v1457_v11, 0.0  ;;  %v1543_v51 = vunpack.c.l.b16 %v1511_v36 }
 0x5c9   :  { %v1548_v26 = vunpack.c.l.b16 %v1516_v55  ;;  %v1555_v59 = vpack.c.b16 %v1546_v25, %v1545_v27  ;;  %v1432_v55 = vmul.f32 %v3859_v13, %v1411_v2  ;;  %v1509_v18 = vpack.c.bf16 %v3943_v1, %v3943_v1 }
 0x5ca   :  { %v3957_v52 = vadd.f32 %v1475_v15, %v3768_v38  ;;  %v1454_v49 = vadd.f32 %v3863_v47, %v1433_v45  ;;  %v1542_v57 = vunpack.c.l.b16 %v1510_v28  ;;  %v1508_v13 = vpack.c.bf16 %v3950_v50, %v3950_v50 }
 0x5cb   :  { %v1556_v41 = vpack.c.b16 %v1548_v26, %v1547_v58  ;;  %v1472_v58 = vmax.f32 %v1456_v24, 0.0  ;;  %v1554_v26 = vpack.c.b16 %v1544_v30, %v1543_v51  ;;  %v3963_v56 = vadd.f32 %v1474_v42, %v3776_v48 }
 0x5cc   :  { %v1453_v46 = vadd.f32 %v3863_v47, %v1432_v55  ;;  %v1471_v54 = vmax.f32 %v1455_v31, 0.0  ;;  %v1541_v5 = vunpack.c.l.b16 %v1509_v18  ;;  %v1507_v38 = vpack.c.bf16 %v3957_v52, %v3957_v52  ;;  %v4224_v18 = vld [vmem:[#allocation26_spill] sm:$0xff] }
 0x5cd   :  { %1565 = vmatpush.bf16.msrb.mxu3 %v1556_v41  ;;  %2096 = vmatpush.bf16.msrb.mxu2 %v1556_v41  ;;  %v3969_v9 = vadd.f32 %v1473_v12, %v3783_v29  ;;  %v1470_v41 = vmax.f32 %v1454_v49, 0.0  ;;  %v1540_v37 = vunpack.c.l.b16 %v1508_v13  ;;  %v1506_v2 = vpack.c.bf16 %v3963_v56, %v3963_v56  ;;  %v3014_v49 = vld [vmem:[%s4184_s1 + $0x8] sm:$0xff]  ;;  %v2942_v13 = vld [vmem:[#allocation7 + $0xb8] sm:$0xff] }
 0x5ce   :  { %v1553_v25 = vpack.c.b16 %v1542_v57, %v1541_v5  ;;  %v3974_v48 = vadd.f32 %v1472_v58, %v3786_v33  ;;  %v1469_v47 = vmax.f32 %v1453_v46, 0.0  ;;  %v1539_v60 = vunpack.c.l.b16 %v1507_v38  ;;  %v4225_v58 = vld [vmem:[#allocation27_spill] sm:$0xff]  ;;  %1708 = vmatpush.bf16.msra.mxu0 %v2942_v13  ;;  %v2941_v46 = vld [vmem:[#allocation7 + $0xb0] sm:$0xff]  ;;  %v2939_v5 = vld [vmem:[#allocation7 + $0xa0] sm:$0xff] }
 0x5cf   :  { %v1505_v11 = vpack.c.bf16 %v3969_v9, %v3969_v9  ;;  %v3979_v15 = vadd.f32 %v1471_v54, %v3796_v63  ;;  %v1538_v27 = vunpack.c.l.b16 %v1506_v2  ;;  %v3984_v45 = vadd.f32 %v1470_v41, %v3799_v35  ;;  %v3018_v57 = vld [vmem:[%s4184_s1 + $0x28] sm:$0xff]  ;;  %v2938_v38 = vld [vmem:[#allocation7 + $0x98] sm:$0xff]  ;;  %v3019_v41 = vld [vmem:[%s4184_s1 + $0x30] sm:$0xff] }
 0x5d0   :  { %v1552_v29 = vpack.c.b16 %v1540_v37, %v1539_v60  ;;  %v1504_v36 = vpack.c.bf16 %v3974_v48, %v3974_v48  ;;  %v3989_v42 = vadd.f32 %v1469_v47, %v3806_v10  ;;  %v3013_v10 = vld [vmem:[%s4184_s1] sm:$0xff]  ;;  %v2940_v54 = vld [vmem:[#allocation7 + $0xa8] sm:$0xff]  ;;  %v3020_v47 = vld [vmem:[%s4184_s1 + $0x38] sm:$0xff] }
 0x5d1   :  { %1566 = vmatpush.bf16.msrb.mxu3 %v1555_v59  ;;  %2097 = vmatpush.bf16.msrb.mxu2 %v1555_v59  ;;  %v1537_v33 = vunpack.c.l.b16 %v1505_v11  ;;  %v1503_v24 = vpack.c.bf16 %v3979_v15, %v3979_v15  ;;  %v1502_v30 = vpack.c.bf16 %v3984_v45, %v3984_v45  ;;  %v2936_v37 = vld [vmem:[#allocation7 + $0x88] sm:$0xff]  ;;  %v2935_v2 = vld [vmem:[#allocation7 + $0x80] sm:$0xff] }
 0x5d2   :  { %v1536_v63 = vunpack.c.l.b16 %v1504_v36  ;;  %v1501_v35 = vpack.c.bf16 %v3989_v42, %v3989_v42  ;;  %1709 = vmatpush.bf16.msra.mxu0 %v2941_v46 }
 0x5d3   :  { %v1551_v59 = vpack.c.b16 %v1538_v27, %v1537_v33  ;;  %v1535_v28 = vunpack.c.l.b16 %v1503_v24  ;;  %v1534_v31 = vunpack.c.l.b16 %v1502_v30 }
 0x5d4   :  { %v1533_v12 = vunpack.c.l.b16 %v1501_v35 }
 0x5d5   :  { %1567 = vmatpush.bf16.msrb.mxu3 %v1554_v26  ;;  %2098 = vmatpush.bf16.msrb.mxu2 %v1554_v26  ;;  %v1550_v55 = vpack.c.b16 %v1536_v63, %v1535_v28  ;;  %v4227_v26 = vld [vmem:[#allocation29_spill] sm:$0xff] }
 0x5d6   :  { %v1549_v51 = vpack.c.b16 %v1534_v31, %v1533_v12  ;;  %1710 = vmatpush.bf16.msra.mxu0 %v2940_v54 }
 0x5d9   :  { %1568 = vmatpush.bf16.msrb.mxu3 %v1553_v25  ;;  %2099 = vmatpush.bf16.msrb.mxu2 %v1553_v25  ;;  %v2937_v25 = vld [vmem:[#allocation7 + $0x90] sm:$0xff] }
 0x5da   :  { %1711 = vmatpush.bf16.msra.mxu0 %v2939_v5  ;;  %v2950_v5 = vld [vmem:[#allocation8 + $0xb8] sm:$0xff] }
 0x5db   :  { %1851 = vmatpush.bf16.msra.mxu1 %v2950_v5 }
 0x5dd   :  { %1569 = vmatpush.bf16.msrb.mxu3 %v1552_v29  ;;  %2100 = vmatpush.bf16.msrb.mxu2 %v1552_v29 }
 0x5de   :  { %1712 = vmatpush.bf16.msra.mxu0 %v2938_v38 }
 0x5e1   :  { %1570 = vmatpush.bf16.msrb.mxu3 %v1551_v59  ;;  %2101 = vmatpush.bf16.msrb.mxu2 %v1551_v59 }
 0x5e2   :  { %1713 = vmatpush.bf16.msra.mxu0 %v2937_v25  ;;  %v2948_v25 = vld [vmem:[#allocation8 + $0xa8] sm:$0xff] }
 0x5e5   :  { %1571 = vmatpush.bf16.msrb.mxu3 %v1550_v55  ;;  %2102 = vmatpush.bf16.msrb.mxu2 %v1550_v55 }
 0x5e6   :  { %1714 = vmatpush.bf16.msra.mxu0 %v2936_v37 }
 0x5e9   :  { %1572 = vmatpush.bf16.msrb.mxu3 %v1549_v51  ;;  %2103 = vmatpush.bf16.msrb.mxu2 %v1549_v51 }
 0x5ea   :  { %1715 = vmatpush.bf16.msra.mxu0 %v2935_v2  ;;  %v2947_v2 = vld [vmem:[#allocation8 + $0xa0] sm:$0xff] }
 0x5ec   :  { %1573 = vmatmul.bf16.vlgmr.msrb.gmra.mxu3 %v3013_v10 }
 0x5ed   :  { %2083 = vmatpush.bf16.msra.mxu3 %v3737_v32  ;;  %v4226_v32 = vld [vmem:[#allocation28_spill] sm:$0xff] }
 0x5f1   :  { %2084 = vmatpush.bf16.msra.mxu3 %v3755_v53  ;;  %v3015_v53 = vld [vmem:[%s4184_s1 + $0x10] sm:$0xff] }
 0x5f5   :  { %2085 = vmatpush.bf16.msra.mxu3 %v3771_v14  ;;  %v3016_v14 = vld [vmem:[%s4184_s1 + $0x18] sm:$0xff] }
 0x5f9   :  { %2086 = vmatpush.bf16.msra.mxu3 %v3788_v40  ;;  %v3017_v40 = vld [vmem:[%s4184_s1 + $0x20] sm:$0xff] }
 0x5fc   :  { %1578 = vmatmul.bf16.gmra.mxu3 %v3014_v49 }
 0x5fd   :  { %2087 = vmatpush.bf16.msra.mxu3 %v4224_v18 }
 0x601   :  { %2088 = vmatpush.bf16.msra.mxu3 %v4225_v58 }
 0x605   :  { %2089 = vmatpush.bf16.msra.mxu3 %v4226_v32 }
 0x609   :  { %2090 = vmatpush.bf16.msra.mxu3 %v4227_v26 }
 0x60c   :  { %1583 = vmatmul.bf16.gmra.mxu3 %v3015_v53 }
 0x61c   :  { %1588 = vmatmul.bf16.gmra.mxu3 %v3016_v14 }
 0x62c   :  { %1593 = vmatmul.bf16.gmra.mxu3 %v3017_v40 }
 0x63c   :  { %1598 = vmatmul.bf16.gmra.mxu3 %v3018_v57 }
 0x64c   :  { %1603 = vmatmul.bf16.gmra.mxu3 %v3019_v41  ;;  %v2949_v41 = vld [vmem:[#allocation8 + $0xb0] sm:$0xff] }
 0x64d   :  { %1852 = vmatpush.bf16.msra.mxu1 %v2949_v41 }
 0x651   :  { %1853 = vmatpush.bf16.msra.mxu1 %v2948_v25 }
 0x655   :  { %1854 = vmatpush.bf16.msra.mxu1 %v2947_v2 }
 0x65c   :  { %1608 = vmatmul.bf16.gmra.mxu3 %v3020_v47 }
 0x66f   :  { %v1574_v60 = vpop.f32.mrf.mxu3 }
 0x670   :  { %v1614_v29 = vadd.f32 %v1574_v60, %v3989_v42 }
 0x677   :  { %v1576_v11 = vpop.f32.mrf.mxu3 }
 0x678   :  { %v1615_v27 = vadd.f32 %v1576_v11, %v3984_v45 }
 0x67a   :  { %v1630_v36 = vpack.c.bf16 %v1615_v27, %v1614_v29  ;;  %v2946_v29 = vld [vmem:[#allocation8 + $0x98] sm:$0xff] }
 0x67b   :  { %1855 = vmatpush.bf16.msra.mxu1 %v2946_v29 }
 0x67c   :  { %1716 = vmatmul.bf16.vlgmr.msra.gmra.mxu0 %v1630_v36  ;;  %v2945_v36 = vld [vmem:[#allocation8 + $0x90] sm:$0xff] }
 0x67f   :  { %v1579_v33 = vpop.f32.mrf.mxu3  ;;  %1856 = vmatpush.bf16.msra.mxu1 %v2945_v36 }
 0x680   :  { %v1616_v59 = vadd.f32 %v1579_v33, %v3979_v15 }
 0x687   :  { %v1581_v24 = vpop.f32.mrf.mxu3 }
 0x688   :  { %v1617_v63 = vadd.f32 %v1581_v24, %v3974_v48  ;;  %v2944_v24 = vld [vmem:[#allocation8 + $0x88] sm:$0xff] }
 0x689   :  { %1857 = vmatpush.bf16.msra.mxu1 %v2944_v24 }
 0x68a   :  { %v1631_v30 = vpack.c.bf16 %v1617_v63, %v1616_v59  ;;  %v2943_v59 = vld [vmem:[#allocation8 + $0x80] sm:$0xff] }
 0x68c   :  { %1721 = vmatmul.bf16.gmra.mxu0 %v1631_v30 }
 0x68d   :  { %1858 = vmatpush.bf16.msra.mxu1 %v2943_v59 }
 0x68f   :  { %v1584_v28 = vpop.f32.mrf.mxu3 }
 0x690   :  { %v1618_v55 = vadd.f32 %v1584_v28, %v3969_v9 }
 0x697   :  { %v1586_v35 = vpop.f32.mrf.mxu3 }
 0x698   :  { %v1619_v31 = vadd.f32 %v1586_v35, %v3963_v56 }
 0x69a   :  { %v1632_v12 = vpack.c.bf16 %v1619_v31, %v1618_v55  ;;  %v3008_v31 = vld [vmem:[%s4190_s7 + $0x2] ss:$0 sm:$0xff] }
 0x69c   :  { %1726 = vmatmul.bf16.gmra.mxu0 %v1632_v12 }
 0x69f   :  { %v1589_v51 = vpop.f32.mrf.mxu3 }
 0x6a0   :  { %v1620_v18 = vadd.f32 %v1589_v51, %v3957_v52 }
 0x6a7   :  { %v1591_v10 = vpop.f32.mrf.mxu3 }
 0x6a8   :  { %v1621_v49 = vadd.f32 %v1591_v10, %v3950_v50 }
 0x6aa   :  { %v1633_v58 = vpack.c.bf16 %v1621_v49, %v1620_v18 }
 0x6ac   :  { %1731 = vmatmul.bf16.gmra.mxu0 %v1633_v58 }
 0x6af   :  { %v1594_v32 = vpop.f32.mrf.mxu3 }
 0x6b0   :  { %v1622_v53 = vadd.f32 %v1594_v32, %v3943_v1 }
 0x6b7   :  { %v1596_v26 = vpop.f32.mrf.mxu3 }
 0x6b8   :  { %v1623_v14 = vadd.f32 %v1596_v26, %v3935_v7 }
 0x6ba   :  { %v1634_v40 = vpack.c.bf16 %v1623_v14, %v1622_v53 }
 0x6bc   :  { %1736 = vmatmul.bf16.gmra.mxu0 %v1634_v40 }
 0x6bf   :  { %v1599_v57 = vpop.f32.mrf.mxu3 }
 0x6c0   :  { %v1624_v46 = vadd.f32 %v1599_v57, %v3927_v17 }
 0x6c7   :  { %v1601_v13 = vpop.f32.mrf.mxu3 }
 0x6c8   :  { %v1625_v54 = vadd.f32 %v1601_v13, %v3919_v3 }
 0x6ca   :  { %v1635_v38 = vpack.c.bf16 %v1625_v54, %v1624_v46 }
 0x6cc   :  { %1741 = vmatmul.bf16.gmra.mxu0 %v1635_v38 }
 0x6cf   :  { %v1604_v37 = vpop.f32.mrf.mxu3 }
 0x6d0   :  { %v1626_v60 = vadd.f32 %v1604_v37, %v3909_v23 }
 0x6d7   :  { %v1606_v47 = vpop.f32.mrf.mxu3 }
 0x6d8   :  { %v1627_v11 = vadd.f32 %v1606_v47, %v3898_v6 }
 0x6da   :  { %v1636_v27 = vpack.c.bf16 %v1627_v11, %v1626_v60 }
 0x6dc   :  { %1746 = vmatmul.bf16.gmra.mxu0 %v1636_v27 }
 0x6df   :  { %v1609_v33 = vpop.f32.mrf.mxu3 }
 0x6e0   :  { %v1628_v30 = vadd.f32 %v1609_v33, %v3891_v8 }
 0x6e7   :  { %v1611_v63 = vpop.f32.mrf.mxu3 }
 0x6e8   :  { %v1629_v28 = vadd.f32 %v1611_v63, %v3904_v19 }
 0x6ea   :  { %v1637_v35 = vpack.c.bf16 %v1629_v28, %v1628_v30 }
 0x6ec   :  { %1751 = vmatmul.bf16.gmra.mxu0 %v1637_v35 }
 0x6f9   :  { %v1717_v55 = vpop.f32.mrf.mxu0 }
 0x6fa   :  { %v1718_v12 = vadd.f32 %v3008_v31, %v1717_v55 }
 0x6fc   :  { %v1757_v18 = vmax.f32 %v1718_v12, 0.0 }
 0x701   :  { %v1719_v51 = vpop.f32.mrf.mxu0 }
 0x702   :  { %v1720_v10 = vadd.f32 %v3008_v31, %v1719_v51 }
 0x704   :  { %v1758_v49 = vmax.f32 %v1720_v10, 0.0 }
 0x706   :  { %v1773_v58 = vpack.c.bf16 %v1758_v49, %v1757_v18 }
 0x708   :  { %1859 = vmatmul.bf16.vlgmr.msra.gmra.mxu1 %v1773_v58 }
 0x709   :  { %v1722_v32 = vpop.f32.mrf.mxu0 }
 0x70a   :  { %v1723_v26 = vadd.f32 %v3008_v31, %v1722_v32 }
 0x70c   :  { %v1759_v40 = vmax.f32 %v1723_v26, 0.0 }
 0x711   :  { %v1724_v53 = vpop.f32.mrf.mxu0 }
 0x712   :  { %v1725_v14 = vadd.f32 %v3008_v31, %v1724_v53 }
 0x714   :  { %v1760_v57 = vmax.f32 %v1725_v14, 0.0 }
 0x716   :  { %v1774_v13 = vpack.c.bf16 %v1760_v57, %v1759_v40 }
 0x718   :  { %1864 = vmatmul.bf16.gmra.mxu1 %v1774_v13 }
 0x719   :  { %v1727_v46 = vpop.f32.mrf.mxu0 }
 0x71a   :  { %v1728_v54 = vadd.f32 %v3008_v31, %v1727_v46 }
 0x71c   :  { %v1761_v41 = vmax.f32 %v1728_v54, 0.0 }
 0x721   :  { %v1729_v5 = vpop.f32.mrf.mxu0 }
 0x722   :  { %v1730_v38 = vadd.f32 %v3008_v31, %v1729_v5 }
 0x724   :  { %v1762_v25 = vmax.f32 %v1730_v38, 0.0 }
 0x726   :  { %v1775_v37 = vpack.c.bf16 %v1762_v25, %v1761_v41 }
 0x728   :  { %1869 = vmatmul.bf16.gmra.mxu1 %v1775_v37 }
 0x729   :  { %v1732_v2 = vpop.f32.mrf.mxu0 }
 0x72a   :  { %v1733_v47 = vadd.f32 %v3008_v31, %v1732_v2  ;;  %v4049_v2 = vld [vmem:[%s4192_s9 + $0x2] ss:$0 sm:$0xff] }
 0x72c   :  { %v1763_v29 = vmax.f32 %v1733_v47, 0.0 }
 0x731   :  { %v1734_v60 = vpop.f32.mrf.mxu0 }
 0x732   :  { %v1735_v11 = vadd.f32 %v3008_v31, %v1734_v60 }
 0x734   :  { %v1764_v27 = vmax.f32 %v1735_v11, 0.0 }
 0x736   :  { %v1776_v36 = vpack.c.bf16 %v1764_v27, %v1763_v29  ;;  %v4052_v29 = vld [vmem:[#allocation10 + $0x2] ss:$0 sm:$0xff] }
 0x738   :  { %1874 = vmatmul.bf16.gmra.mxu1 %v1776_v36  ;;  %v4055_v36 = vld [vmem:[#allocation11 + $0x2] ss:$0 sm:$0xff] }
 0x739   :  { %v1737_v33 = vpop.f32.mrf.mxu0 }
 0x73a   :  { %v1738_v24 = vadd.f32 %v3008_v31, %v1737_v33 }
 0x73c   :  { %v1765_v30 = vmax.f32 %v1738_v24, 0.0 }
 0x741   :  { %v1739_v59 = vpop.f32.mrf.mxu0 }
 0x742   :  { %v1740_v63 = vadd.f32 %v3008_v31, %v1739_v59 }
 0x744   :  { %v1766_v28 = vmax.f32 %v1740_v63, 0.0 }
 0x746   :  { %v1777_v35 = vpack.c.bf16 %v1766_v28, %v1765_v30 }
 0x748   :  { %1879 = vmatmul.bf16.gmra.mxu1 %v1777_v35 }
 0x749   :  { %v1742_v55 = vpop.f32.mrf.mxu0 }
 0x74a   :  { %v1743_v12 = vadd.f32 %v3008_v31, %v1742_v55 }
 0x74c   :  { %v1767_v18 = vmax.f32 %v1743_v12, 0.0 }
 0x751   :  { %v1744_v51 = vpop.f32.mrf.mxu0 }
 0x752   :  { %v1745_v10 = vadd.f32 %v3008_v31, %v1744_v51 }
 0x754   :  { %v1768_v49 = vmax.f32 %v1745_v10, 0.0 }
 0x756   :  { %v1778_v58 = vpack.c.bf16 %v1768_v49, %v1767_v18 }
 0x758   :  { %1884 = vmatmul.bf16.gmra.mxu1 %v1778_v58 }
 0x759   :  { %v1747_v32 = vpop.f32.mrf.mxu0 }
 0x75a   :  { %v1748_v26 = vadd.f32 %v3008_v31, %v1747_v32 }
 0x75c   :  { %v1769_v40 = vmax.f32 %v1748_v26, 0.0 }
 0x761   :  { %v1749_v53 = vpop.f32.mrf.mxu0 }
 0x762   :  { %v1750_v14 = vadd.f32 %v3008_v31, %v1749_v53 }
 0x764   :  { %v1770_v57 = vmax.f32 %v1750_v14, 0.0 }
 0x766   :  { %v1779_v13 = vpack.c.bf16 %v1770_v57, %v1769_v40 }
 0x768   :  { %1889 = vmatmul.bf16.gmra.mxu1 %v1779_v13 }
 0x769   :  { %v1752_v46 = vpop.f32.mrf.mxu0 }
 0x76a   :  { %v1753_v54 = vadd.f32 %v3008_v31, %v1752_v46 }
 0x76c   :  { %v1771_v41 = vmax.f32 %v1753_v54, 0.0 }
 0x771   :  { %v1754_v5 = vpop.f32.mrf.mxu0 }
 0x772   :  { %v1755_v38 = vadd.f32 %v3008_v31, %v1754_v5 }
 0x774   :  { %v1772_v25 = vmax.f32 %v1755_v38, 0.0 }
 0x776   :  { %v1780_v37 = vpack.c.bf16 %v1772_v25, %v1771_v41 }
 0x778   :  { %1894 = vmatmul.bf16.gmra.mxu1 %v1780_v37 }
 0x785   :  { %v1860_v47 = vpop.f32.mrf.mxu1 }
 0x786   :  { %v1861_v60 = vadd.f32 %v4049_v2, %v1860_v47 }
 0x788   :  { %v1900_v11 = vmax.f32 %v1861_v60, 0.0 }
 0x78a   :  { %v1916_v27 = vmul.f32 %v1900_v11, %v3727_v61 }
 0x78c   :  { %v1937_v31 = vmul.f32 %v4052_v29, %v1916_v27 }
 0x78d   :  { %v1862_v33 = vpop.f32.mrf.mxu1 }
 0x78e   :  { %v1958_v24 = vadd.f32 %v4055_v36, %v1937_v31  ;;  %v1863_v59 = vadd.f32 %v4049_v2, %v1862_v33 }
 0x790   :  { %v1901_v63 = vmax.f32 %v1863_v59, 0.0  ;;  %v1974_v30 = vmax.f32 %v1958_v24, 0.0 }
 0x792   :  { %v1917_v28 = vmul.f32 %v1901_v63, %v3715_v44  ;;  %v1990_v51 = vadd.f32 %v1974_v30, %v3989_v42 }
 0x794   :  { %v1938_v35 = vmul.f32 %v4052_v29, %v1917_v28  ;;  %v2006_v32 = vpack.c.bf16 %v1990_v51, %v1990_v51 }
 0x795   :  { %v1865_v55 = vpop.f32.mrf.mxu1 }
 0x796   :  { %v1959_v12 = vadd.f32 %v4055_v36, %v1938_v35  ;;  %v1866_v61 = vadd.f32 %v4049_v2, %v1865_v55  ;;  %v4070_v57 = vunpack.c.l.b16 %v2006_v32 }
 0x798   :  { %v1975_v10 = vmax.f32 %v1959_v12, 0.0  ;;  %v1902_v18 = vmax.f32 %v1866_v61, 0.0 }
 0x79a   :  { %v1918_v49 = vmul.f32 %v1902_v18, %v3668_v22  ;;  %v1991_v58 = vadd.f32 %v1975_v10, %v3984_v45 }
 0x79c   :  { %v1939_v26 = vmul.f32 %v4052_v29, %v1918_v49  ;;  %v2007_v53 = vpack.c.bf16 %v1991_v58, %v1991_v58 }
 0x79d   :  { %v1867_v44 = vpop.f32.mrf.mxu1 }
 0x79e   :  { %v1960_v14 = vadd.f32 %v4055_v36, %v1939_v26  ;;  %v1868_v40 = vadd.f32 %v4049_v2, %v1867_v44  ;;  %v4072_v13 = vunpack.c.l.b16 %v2007_v53 }
 0x7a0   :  { %v1903_v42 = vmax.f32 %v1868_v40, 0.0  ;;  %v2054_v46 = vpack.c.b16 %v4072_v13, %v4070_v57  ;;  %v1976_v22 = vmax.f32 %v1960_v14, 0.0  ;;  %v2960_v57 = vld [vmem:[#allocation13 + $0x48] sm:$0xff]  ;;  %v2959_v13 = vld [vmem:[#allocation13 + $0x40] sm:$0xff] }
 0x7a2   :  { %v1919_v45 = vmul.f32 %v1903_v42, %v3695_v4  ;;  %v1992_v25 = vadd.f32 %v1976_v22, %v3979_v15 }
 0x7a4   :  { %v1940_v54 = vmul.f32 %v4052_v29, %v1919_v45  ;;  %v2008_v27 = vpack.c.bf16 %v1992_v25, %v1992_v25 }
 0x7a5   :  { %v1870_v5 = vpop.f32.mrf.mxu1 }
 0x7a6   :  { %v1961_v38 = vadd.f32 %v4055_v36, %v1940_v54  ;;  %v1871_v41 = vadd.f32 %v4049_v2, %v1870_v5  ;;  %v4086_v63 = vunpack.c.l.b16 %v2008_v27 }
 0x7a8   :  { %v1977_v37 = vmax.f32 %v1961_v38, 0.0  ;;  %v1904_v47 = vmax.f32 %v1871_v41, 0.0 }
 0x7aa   :  { %v1920_v60 = vmul.f32 %v1904_v47, %v3653_v43  ;;  %v1993_v11 = vadd.f32 %v1977_v37, %v3974_v48 }
 0x7ac   :  { %v1941_v31 = vmul.f32 %v4052_v29, %v1920_v60  ;;  %v2009_v33 = vpack.c.bf16 %v1993_v11, %v1993_v11 }
 0x7ad   :  { %v1872_v4 = vpop.f32.mrf.mxu1 }
 0x7ae   :  { %v1962_v24 = vadd.f32 %v4055_v36, %v1941_v31  ;;  %v1873_v59 = vadd.f32 %v4049_v2, %v1872_v4  ;;  %v4088_v30 = vunpack.c.l.b16 %v2009_v33 }
 0x7b0   :  { %v1905_v15 = vmax.f32 %v1873_v59, 0.0  ;;  %v2055_v28 = vpack.c.b16 %v4088_v30, %v4086_v63  ;;  %v1978_v43 = vmax.f32 %v1962_v24, 0.0  ;;  %v2972_v63 = vld [vmem:[#allocation13 + $0xa8] sm:$0xff]  ;;  %v2963_v30 = vld [vmem:[#allocation13 + $0x60] sm:$0xff] }
 0x7b2   :  { %v1921_v48 = vmul.f32 %v1905_v15, %v3677_v39  ;;  %v1994_v51 = vadd.f32 %v1978_v43, %v3969_v9  ;;  %v4121_v15 = vld [vmem:[#allocation2] sm:$0xf] }
 0x7b3   :  { %2078 = vmatmul.bf16.vlgmr.msra.gmra.mxu2 %v4121_v15  ;;  %2091 = vmatmul.bf16.vlgmr.msra.gmra.mxu3 %v4121_v15 }
 0x7b4   :  { %v1942_v35 = vmul.f32 %v4052_v29, %v1921_v48  ;;  %v2010_v32 = vpack.c.bf16 %v1994_v51, %v1994_v51 }
 0x7b5   :  { %v1875_v55 = vpop.f32.mrf.mxu1 }
 0x7b6   :  { %v1963_v12 = vadd.f32 %v4055_v36, %v1942_v35  ;;  %v1876_v61 = vadd.f32 %v4049_v2, %v1875_v55  ;;  %v4102_v40 = vunpack.c.l.b16 %v2010_v32 }
 0x7b8   :  { %v1979_v10 = vmax.f32 %v1963_v12, 0.0  ;;  %v1906_v18 = vmax.f32 %v1876_v61, 0.0 }
 0x7ba   :  { %v1922_v49 = vmul.f32 %v1906_v18, %v3640_v0  ;;  %v1995_v58 = vadd.f32 %v1979_v10, %v3963_v56  ;;  %v4228_v10 = vld [vmem:[#allocation22_spill] sm:$0xff] }
 0x7bc   :  { %v1943_v26 = vmul.f32 %v4052_v29, %v1922_v49  ;;  %v2011_v53 = vpack.c.bf16 %v1995_v58, %v1995_v58 }
 0x7bd   :  { %v1877_v39 = vpop.f32.mrf.mxu1 }
 0x7be   :  { %v1964_v44 = vadd.f32 %v4055_v36, %v1943_v26  ;;  %v1878_v14 = vadd.f32 %v4049_v2, %v1877_v39  ;;  %v4104_v42 = vunpack.c.l.b16 %v2011_v53  ;;  %v4229_v53 = vld [vmem:[#allocation20_spill] sm:$0xff] }
 0x7c0   :  { %v1907_v9 = vmax.f32 %v1878_v14, 0.0  ;;  %v2056_v22 = vpack.c.b16 %v4104_v42, %v4102_v40  ;;  %v1980_v0 = vmax.f32 %v1964_v44, 0.0  ;;  %v4230_v14 = vld [vmem:[#allocation23_spill] sm:$0xff]  ;;  %v2973_v40 = vld [vmem:[#allocation13 + $0xb0] sm:$0xff]  ;;  %v2964_v42 = vld [vmem:[#allocation13 + $0x68] sm:$0xff] }
 0x7c2   :  { %v1923_v56 = vmul.f32 %v1907_v9, %v4223_v34  ;;  %v1996_v38 = vadd.f32 %v1980_v0, %v3957_v52 }
 0x7c3   :  { %2104 = vmatmul.bf16.vlgmr.msrb.gmra.mxu2 %v4121_v15 }
 0x7c4   :  { %v1944_v45 = vmul.f32 %v4052_v29, %v1923_v56  ;;  %v2012_v37 = vpack.c.bf16 %v1996_v38, %v1996_v38 }
 0x7c5   :  { %v1880_v54 = vpop.f32.mrf.mxu1 }
 0x7c6   :  { %v1965_v5 = vadd.f32 %v4055_v36, %v1944_v45  ;;  %v4113_v11 = vunpack.c.l.b16 %v2012_v37  ;;  %v1881_v58 = vadd.f32 %v4049_v2, %v1880_v54 }
 0x7c8   :  { %v1981_v41 = vmax.f32 %v1965_v5, 0.0  ;;  %v1908_v45 = vmax.f32 %v1881_v58, 0.0 }
 0x7ca   :  { %v1997_v25 = vadd.f32 %v1981_v41, %v3950_v50 }
 0x7cc   :  { %v2013_v47 = vpack.c.bf16 %v1997_v25, %v1997_v25 }
 0x7cd   :  { %v1882_v60 = vpop.f32.mrf.mxu1 }
 0x7ce   :  { %v4115_v27 = vunpack.c.l.b16 %v2013_v47  ;;  %v1883_v61 = vadd.f32 %v4049_v2, %v1882_v60 }
 0x7d0   :  { %v2057_v34 = vpack.c.b16 %v4115_v27, %v4113_v11  ;;  %v1909_v44 = vmax.f32 %v1883_v61, 0.0  ;;  %v2965_v11 = vld [vmem:[#allocation13 + $0x70] sm:$0xff] }
 0x7d1   :  { %v2981_v27 = vld [vmem:[#allocation13 + $0xf0] sm:$0xff] }
 0x7d5   :  { %v1885_v31 = vpop.f32.mrf.mxu1 }
 0x7d6   :  { %v1886_v35 = vadd.f32 %v4049_v2, %v1885_v31 }
 0x7d8   :  { %v1910_v32 = vmax.f32 %v1886_v35, 0.0 }
 0x7da   :  { %v1926_v38 = vmul.f32 %v1910_v32, %v4222_v62 }
 0x7dd   :  { %v1887_v33 = vpop.f32.mrf.mxu1 }
 0x7de   :  { %v1888_v50 = vadd.f32 %v4049_v2, %v1887_v33  ;;  %v1924_v33 = vmul.f32 %v1908_v45, %v3619_v16 }
 0x7e0   :  { %v1911_v51 = vmax.f32 %v1888_v50, 0.0 }
 0x7e2   :  { %v1927_v9 = vmul.f32 %v1911_v51, %v4230_v14 }
 0x7e4   :  { %v1948_v47 = vmul.f32 %v4052_v29, %v1927_v9 }
 0x7e5   :  { %v1890_v4 = vpop.f32.mrf.mxu1 }
 0x7e6   :  { %v1891_v52 = vadd.f32 %v4049_v2, %v1890_v4  ;;  %v1947_v4 = vmul.f32 %v4052_v29, %v1926_v38 }
 0x7e8   :  { %v1912_v55 = vmax.f32 %v1891_v52, 0.0  ;;  %v1968_v16 = vadd.f32 %v4055_v36, %v1947_v4 }
 0x7ea   :  { %v1928_v26 = vmul.f32 %v1912_v55, %v3611_v20  ;;  %v4231_v20 = vld [vmem:[#allocation24_spill] sm:$0xff] }
 0x7eb   :  { %v1925_v37 = vmul.f32 %v1909_v44, %v4231_v20 }
 0x7ec   :  { %v1949_v41 = vmul.f32 %v4052_v29, %v1928_v26 }
 0x7ed   :  { %v1892_v24 = vpop.f32.mrf.mxu1  ;;  %v1946_v52 = vmul.f32 %v4052_v29, %v1925_v37 }
 0x7ee   :  { %v1893_v59 = vadd.f32 %v4049_v2, %v1892_v24  ;;  %v1970_v24 = vadd.f32 %v4055_v36, %v1949_v41 }
 0x7f0   :  { %v1913_v43 = vmax.f32 %v1893_v59, 0.0  ;;  %v1986_v35 = vmax.f32 %v1970_v24, 0.0  ;;  %v2953_v24 = vld [vmem:[#allocation13 + $0x10] sm:$0xff] }
 0x7f2   :  { %v1929_v18 = vmul.f32 %v1913_v43, %v4228_v10 }
 0x7f4   :  { %v1950_v0 = vmul.f32 %v4052_v29, %v1929_v18 }
 0x7f5   :  { %v1895_v48 = vpop.f32.mrf.mxu1 }
 0x7f6   :  { %v1896_v12 = vadd.f32 %v4049_v2, %v1895_v48  ;;  %v1971_v60 = vadd.f32 %v4055_v36, %v1950_v0  ;;  %v1945_v48 = vmul.f32 %v4052_v29, %v1924_v33  ;;  %v2955_v33 = vld [vmem:[#allocation13 + $0x20] sm:$0xff] }
 0x7f8   :  { %v1914_v49 = vmax.f32 %v1896_v12, 0.0  ;;  %v1987_v50 = vmax.f32 %v1971_v60, 0.0  ;;  %v1966_v18 = vadd.f32 %v4055_v36, %v1945_v48  ;;  %v2978_v48 = vld [vmem:[#allocation13 + $0xd8] sm:$0xff] }
 0x7fa   :  { %v1930_v39 = vmul.f32 %v1914_v49, %v4229_v53  ;;  %v2003_v10 = vadd.f32 %v1987_v50, %v3898_v6  ;;  %v1984_v49 = vmax.f32 %v1968_v16, 0.0  ;;  %v1982_v44 = vmax.f32 %v1966_v18, 0.0  ;;  %v2979_v50 = vld [vmem:[#allocation13 + $0xe0] sm:$0xff]  ;;  %v2969_v16 = vld [vmem:[#allocation13 + $0x90] sm:$0xff] }
 0x7fc   :  { %v1951_v56 = vmul.f32 %v4052_v29, %v1930_v39  ;;  %v2019_v39 = vpack.c.bf16 %v2003_v10, %v2003_v10  ;;  %v1998_v41 = vadd.f32 %v1982_v44, %v3943_v1  ;;  %v2954_v1 = vld [vmem:[#allocation13 + $0x18] sm:$0xff] }
 0x7fd   :  { %v1897_v5 = vpop.f32.mrf.mxu1 }
 0x7fe   :  { %v1972_v54 = vadd.f32 %v4055_v36, %v1951_v56  ;;  %v1898_v25 = vadd.f32 %v4049_v2, %v1897_v5  ;;  %v1969_v2 = vadd.f32 %v4055_v36, %v1948_v47  ;;  %v2000_v56 = vadd.f32 %v1984_v49, %v3927_v17  ;;  %v2956_v17 = vld [vmem:[#allocation13 + $0x28] sm:$0xff] }
 0x7ff   :  { %v2051_v45 = vunpack.c.l.b16 %v2019_v39  ;;  %v2014_v47 = vpack.c.bf16 %v1998_v41, %v1998_v41 }
 0x800   :  { %v1915_v31 = vmax.f32 %v1898_v25, 0.0  ;;  %v1988_v62 = vmax.f32 %v1972_v54, 0.0  ;;  %v1985_v61 = vmax.f32 %v1969_v2, 0.0  ;;  %v2957_v54 = vld [vmem:[#allocation13 + $0x30] sm:$0xff]  ;;  %v2974_v2 = vld [vmem:[#allocation13 + $0xb8] sm:$0xff] }
 0x802   :  { %v1931_v59 = vmul.f32 %v1915_v31, %v3613_v21  ;;  %v2004_v55 = vadd.f32 %v1988_v62, %v3891_v8  ;;  %v1967_v21 = vadd.f32 %v4055_v36, %v1946_v52  ;;  %v2001_v8 = vadd.f32 %v1985_v61, %v3919_v3  ;;  %v2952_v62 = vld [vmem:[#allocation13 + $0x8] sm:$0xff]  ;;  %v2951_v52 = vld [vmem:[#allocation13] sm:$0xff] }
 0x804   :  { %v1952_v43 = vmul.f32 %v4052_v29, %v1931_v59  ;;  %v2020_v32 = vpack.c.bf16 %v2004_v55, %v2004_v55  ;;  %v2002_v29 = vadd.f32 %v1986_v35, %v3909_v23  ;;  %v1983_v26 = vmax.f32 %v1967_v21, 0.0  ;;  %v2966_v59 = vld [vmem:[#allocation13 + $0x78] sm:$0xff]  ;;  %v2977_v35 = vld [vmem:[#allocation13 + $0xd0] sm:$0xff]  ;;  %v2968_v55 = vld [vmem:[#allocation13 + $0x88] sm:$0xff] }
 0x805   :  { %v2016_v23 = vpack.c.bf16 %v2000_v56, %v2000_v56  ;;  %v2967_v21 = vld [vmem:[#allocation13 + $0x80] sm:$0xff] }
 0x806   :  { %v1973_v12 = vadd.f32 %v4055_v36, %v1952_v43  ;;  %v2052_v14 = vunpack.c.l.b16 %v2020_v32  ;;  %v2018_v0 = vpack.c.bf16 %v2002_v29, %v2002_v29  ;;  %v2017_v36 = vpack.c.bf16 %v2001_v8, %v2001_v8  ;;  %v2970_v43 = vld [vmem:[#allocation13 + $0x98] sm:$0xff] }
 0x807   :  { %v1999_v5 = vadd.f32 %v1983_v26, %v3935_v7  ;;  %v2048_v37 = vunpack.c.l.b16 %v2016_v23  ;;  %v2046_v7 = vunpack.c.l.b16 %v2014_v47 }
 0x808   :  { %v1989_v51 = vmax.f32 %v1973_v12, 0.0  ;;  %v2050_v38 = vunpack.c.l.b16 %v2018_v0  ;;  %v2049_v25 = vunpack.c.l.b16 %v2017_v36  ;;  %v2976_v12 = vld [vmem:[#allocation13 + $0xc8] sm:$0xff]  ;;  %v3012_v36 = vld [vmem:[%s4196_s13] ss:$0 sm:$0xff] }
 0x809   :  { %v2015_v20 = vpack.c.bf16 %v1999_v5, %v1999_v5 }
 0x80a   :  { %v2005_v58 = vadd.f32 %v1989_v51, %v3904_v19  ;;  %v2958_v19 = vld [vmem:[#allocation13 + $0x38] sm:$0xff]  ;;  %v2060_v3 = vpack.c.b16 %v2051_v45, %v2050_v38  ;;  %v2059_v60 = vpack.c.b16 %v2049_v25, %v2048_v37 }
 0x80b   :  { %2386 = vmatpush.bf16.msra.mxu2 %v2958_v19  ;;  %v2047_v31 = vunpack.c.l.b16 %v2015_v20 }
 0x80c   :  { %v2021_v53 = vpack.c.bf16 %v2005_v58, %v2005_v58 }
 0x80d   :  { %v2058_v4 = vpack.c.b16 %v2047_v31, %v2046_v7 }
 0x80e   :  { %v2053_v9 = vunpack.c.l.b16 %v2021_v53  ;;  %v2975_v53 = vld [vmem:[#allocation13 + $0xc0] sm:$0xff] }
 0x80f   :  { %2387 = vmatpush.bf16.msra.mxu2 %v2957_v54 }
 0x810   :  { %v2061_v6 = vpack.c.b16 %v2053_v9, %v2052_v14 }
 0x812   :  { %2109 = vmatpush.bf16.msrb.mxu3 %v2061_v6 }
 0x813   :  { %2388 = vmatpush.bf16.msra.mxu2 %v2956_v17 }
 0x816   :  { %2110 = vmatpush.bf16.msrb.mxu3 %v2060_v3 }
 0x817   :  { %2389 = vmatpush.bf16.msra.mxu2 %v2955_v33 }
 0x81a   :  { %2111 = vmatpush.bf16.msrb.mxu3 %v2059_v60 }
 0x81b   :  { %2390 = vmatpush.bf16.msra.mxu2 %v2954_v1 }
 0x81e   :  { %2112 = vmatpush.bf16.msrb.mxu3 %v2058_v4 }
 0x81f   :  { %2391 = vmatpush.bf16.msra.mxu2 %v2953_v24 }
 0x822   :  { %2113 = vmatpush.bf16.msrb.mxu3 %v2057_v34  ;;  %v2980_v34 = vld [vmem:[#allocation13 + $0xe8] sm:$0xff] }
 0x823   :  { %2392 = vmatpush.bf16.msra.mxu2 %v2952_v62 }
 0x826   :  { %2114 = vmatpush.bf16.msrb.mxu3 %v2056_v22  ;;  %v2961_v22 = vld [vmem:[#allocation13 + $0x50] sm:$0xff] }
 0x827   :  { %2393 = vmatpush.bf16.msra.mxu2 %v2951_v52 }
 0x82a   :  { %2115 = vmatpush.bf16.msrb.mxu3 %v2055_v28  ;;  %v2962_v28 = vld [vmem:[#allocation13 + $0x58] sm:$0xff] }
 0x82b   :  { %2412 = vmatpush.bf16.msrb.mxu2 %v2974_v2 }
 0x82e   :  { %2116 = vmatpush.bf16.msrb.mxu3 %v2054_v46  ;;  %v2982_v46 = vld [vmem:[#allocation13 + $0xf8] sm:$0xff] }
 0x82f   :  { %2413 = vmatpush.bf16.msrb.mxu2 %v2973_v40 }
 0x831   :  { %2117 = vmatmul.bf16.vlgmr.msrb.gmra.mxu3 %v4121_v15  ;;  %v2971_v15 = vld [vmem:[#allocation13 + $0xa0] sm:$0xff] }
 0x832   :  { %2399 = vmatpush.bf16.msra.mxu3 %v2966_v59 }
 0x833   :  { %2414 = vmatpush.bf16.msrb.mxu2 %v2972_v63 }
 0x836   :  { %2400 = vmatpush.bf16.msra.mxu3 %v2965_v11  ;;  %v2079_v61 = vpop.f32.mrf.mxu2  ;;  %v2092_v51 = vpop.f32.mrf.mxu3 }
 0x837   :  { %2415 = vmatpush.bf16.msrb.mxu2 %v2971_v15  ;;  %v2122_v10 = vpack.c.bf16 %v2079_v61, %v2079_v61  ;;  %v2123_v18 = vpack.c.bf16 %v2092_v51, %v2092_v51 }
 0x839   :  { %2394 = vmatmul.bf16.vlgmr.msra.gmra.mxu2 %v2122_v10 }
 0x83a   :  { %2401 = vmatpush.bf16.msra.mxu3 %v2964_v42 }
 0x83b   :  { %2416 = vmatpush.bf16.msrb.mxu2 %v2970_v43 }
 0x83e   :  { %2402 = vmatpush.bf16.msra.mxu3 %v2963_v30  ;;  %v2081_v49 = vpop.f32.mrf.mxu2  ;;  %v2094_v58 = vpop.f32.mrf.mxu3 }
 0x83f   :  { %2417 = vmatpush.bf16.msrb.mxu2 %v2969_v16 }
 0x842   :  { %2403 = vmatpush.bf16.msra.mxu3 %v2962_v28 }
 0x843   :  { %2418 = vmatpush.bf16.msrb.mxu2 %v2968_v55 }
 0x846   :  { %2404 = vmatpush.bf16.msra.mxu3 %v2961_v22  ;;  %v2105_v32 = vpop.f32.mrf.mxu2 }
 0x847   :  { %2419 = vmatpush.bf16.msrb.mxu2 %v2967_v21  ;;  %v2124_v29 = vpack.c.bf16 %v2105_v32, %v2105_v32 }
 0x84a   :  { %2405 = vmatpush.bf16.msra.mxu3 %v2960_v57  ;;  %2420 = vmatmul.bf16.vlgmr.msrb.gmra.mxu2 %v2124_v29 }
 0x84e   :  { %2406 = vmatpush.bf16.msra.mxu3 %v2959_v13  ;;  %v2107_v26 = vpop.f32.mrf.mxu2 }
 0x851   :  { %2407 = vmatmul.bf16.vlgmr.msra.gmra.mxu3 %v2123_v18 }
 0x852   :  { %2425 = vmatpush.bf16.msrb.mxu3 %v2982_v46 }
 0x856   :  { %2426 = vmatpush.bf16.msrb.mxu3 %v2981_v27 }
 0x85a   :  { %2427 = vmatpush.bf16.msrb.mxu3 %v2980_v34 }
 0x85e   :  { %2428 = vmatpush.bf16.msrb.mxu3 %v2979_v50 }
 0x862   :  { %2429 = vmatpush.bf16.msrb.mxu3 %v2978_v48 }
 0x866   :  { %2430 = vmatpush.bf16.msrb.mxu3 %v2977_v35 }
 0x86a   :  { %2431 = vmatpush.bf16.msrb.mxu3 %v2976_v12 }
 0x86e   :  { %2432 = vmatpush.bf16.msrb.mxu3 %v2975_v53 }
 0x8b4   :  { %v2118_v39 = vpop.f32.mrf.mxu3 }
 0x8b5   :  { %v2125_v8 = vpack.c.bf16 %v2118_v39, %v2118_v39 }
 0x8b7   :  { %2433 = vmatmul.bf16.vlgmr.msrb.gmra.mxu3 %v2125_v8 }
 0x8bc   :  { %v2120_v44 = vpop.f32.mrf.mxu3  ;;  %v2395_v14 = vpop.f32.mrf.mxu2 }
 0x8bd   :  { %v2396_v5 = vadd.f32 %v3012_v36, %v2395_v14 }
 0x8c4   :  { %v2397_v0 = vpop.f32.mrf.mxu2 }
 0x8cd   :  { %v2421_v6 = vpop.f32.mrf.mxu2 }
 0x8d4   :  { %v2408_v9 = vpop.f32.mrf.mxu3 }
 0x8d5   :  { %v2423_v45 = vpop.f32.mrf.mxu2  ;;  %v2409_v19 = vadd.f32 %v2408_v9, %v2396_v5 }
 0x8d7   :  { %v2422_v38 = vadd.f32 %v2421_v6, %v2409_v19 }
 0x8dc   :  { %v2410_v56 = vpop.f32.mrf.mxu3 }
 0x93a   :  { %v2434_v23 = vpop.f32.mrf.mxu3 }
 0x93b   :  { %v2435_v41 = vadd.f32 %v2434_v23, %v2422_v38 }
 0x93d   :  { %2438 = vst [vmem:[#allocation14] sm:$0xff] %v2435_v41 }
 0x93e   :  { %2449 = dma.vmem_to_hbm [thread:$0]  %s2445_s3, 128, %s2447_s27, [#allocation4]  }
 0x942   :  { %v2436_v54 = vpop.f32.mrf.mxu3 }
 0x943   :  { %3221 = dma.done.wait [#allocation4], 128  }
 0x944   :  { %3222 = vsyncadd [#allocation4], 4294967168 }
 0x945   :  { %2454 = vsyncpa [#allocation3], 1 }
 0x946   :  { %2455 = vsyncpa [#allocation6], 1 }
 0x947   :  { %2456 = vsyncpa [#allocation9], 1 }
 0x948   :  { %2457 = vsyncpa [#allocation12], 1 }
 0x949   :  { %2458 = vsyncpa [#allocation4], 1 }

</bundles_post_ra>
